<compile_context>
chip_gen: v7x
topology: tpu7x:2x2x1
jax: 0.10.0
libtpu: 0.0.40
codegen_flags: <defaults>
</compile_context>

<pallas_src>
import functools

import jax
import jax.numpy as jnp
from jax.experimental import pallas as pl
from jax.experimental.pallas import tpu as pltpu

HIDDEN = 64
CONTRASTIVE = 8
NUM_LAYERS = 4
BN_EPS = 1e-5

MAX_TILE_N = 512          # node-row tile
MAX_TILE_E = 1024         # edge tile for the scatter reduction
VMEM_LIMIT = 32 * 1024 * 1024   # fits v7x (64 MiB phys / 32 MiB scoped default)


def _round_up(x, m):
    return ((x + m - 1) // m) * m


def _elu(x):
    # ELU(alpha=1); clamp the exp argument so the unselected branch is safe.
    return jnp.where(x > 0, x, jnp.exp(jnp.minimum(x, 0.0)) - 1.0)


def _mxdot(a, b):
    # bf16 MXU matmul with f32 accumulation.
    return jnp.dot(a.astype(jnp.bfloat16), b.astype(jnp.bfloat16),
                   preferred_element_type=jnp.float32)


# ----------------------------- Pallas kernels ------------------------------


def _lc_kernel(x_ref, w1_ref, b1_ref, w2_ref, b2_ref, o_ref):
    """lc_encode: ELU(ELU(x @ W1 + b1) @ W2 + b2), fused per row tile."""
    h = _elu(_mxdot(x_ref[...], w1_ref[...]) + b1_ref[...])
    o_ref[...] = _elu(_mxdot(h, w2_ref[...]) + b2_ref[...])


def _proj_kernel(h_ref, w_ref, o_ref):
    """Node-level projection: [h @ (W_top - W_bot) | h @ W_bot] -> (TN, 2H)."""
    o_ref[...] = _mxdot(h_ref[...], w_ref[...])


def _edge_scatter_kernel(row_ref, pre_ref, b_ref, s_ref, t_ref, hres_ref,
                         o_ref, acc_ref, cnt_ref, *, tile_n, tile_e):
    """Per-edge message = BN(ELU(P1[row]+P2[col]+b)); scatter-mean onto `row`
    plus residual.  Grid = (row tiles [parallel], edge tiles [arbitrary])."""
    e = pl.program_id(1)

    @pl.when(e == 0)
    def _():
        acc_ref[...] = jnp.zeros_like(acc_ref)
        cnt_ref[...] = jnp.zeros_like(cnt_ref)

    # Edge message (Dropout = identity in eval mode).
    msg = _elu(pre_ref[...] + b_ref[...]) * s_ref[...] + t_ref[...]      # (TE,H) f32

    # Transient (TILE_N, TILE_E) one-hot for this row tile; padded edges carry
    # row = -1 and therefore match nothing.
    n0 = pl.program_id(0) * tile_n
    node_ids = n0 + jax.lax.broadcasted_iota(jnp.int32, (tile_n, tile_e), 0)
    match = node_ids == row_ref[...]                                     # (TN,TE)
    onehot = match.astype(jnp.bfloat16)

    acc_ref[...] += jnp.dot(onehot, msg.astype(jnp.bfloat16),
                            preferred_element_type=jnp.float32)
    cnt_ref[...] += jnp.sum(match.astype(jnp.float32), axis=1, keepdims=True)

    @pl.when(e == pl.num_programs(1) - 1)
    def _():
        denom = jnp.maximum(cnt_ref[...], 1.0)          # bincount clamp(min=1)
        o_ref[...] = acc_ref[...] / denom + hres_ref[...]


def _head_kernel(h_ref, ws_ref, bs_ref, wc1_ref, bc1_ref,
                 ws1_ref, bs1_ref, s1s_ref, s1t_ref,
                 ws2_ref, bs2_ref, wfc_ref, wfs_ref, bf_ref, o_ref):
    """shared_out + contrastive_head + split_head fused; the two final narrow
    layers are packed into one lane-dense (.., 128) matmul."""
    feats = _elu(_mxdot(h_ref[...], ws_ref[...]) + bs_ref[...])          # (TN,64)
    c = _elu(_mxdot(feats, wc1_ref[...]) + bc1_ref[...])                 # (TN,32)
    s = _elu(_mxdot(feats, ws1_ref[...]) + bs1_ref[...]) * s1s_ref[...] + s1t_ref[...]
    s = _elu(_mxdot(s, ws2_ref[...]) + bs2_ref[...])                     # (TN,32)
    o_ref[...] = _mxdot(c, wfc_ref[...]) + _mxdot(s, wfs_ref[...]) + bf_ref[...]


# ----------------------------- kernel wrappers ------------------------------


def _cparams(semantics):
    return pltpu.CompilerParams(dimension_semantics=semantics,
                                vmem_limit_bytes=VMEM_LIMIT)


def lc_encode(x, w1, b1, w2, b2, *, tile_n):
    n, f_in = x.shape
    full = lambda a: pl.BlockSpec(a.shape, lambda i: (0, 0))
    return pl.pallas_call(
        _lc_kernel,
        out_shape=jax.ShapeDtypeStruct((n, HIDDEN), jnp.float32),
        grid=(n // tile_n,),
        in_specs=[pl.BlockSpec((tile_n, f_in), lambda i: (i, 0)),
                  full(w1), full(b1), full(w2), full(b2)],
        out_specs=pl.BlockSpec((tile_n, HIDDEN), lambda i: (i, 0)),
        compiler_params=_cparams(("parallel",)),
    )(x, w1, b1, w2, b2)


def node_project(h, w_pack, *, tile_n):
    n = h.shape[0]
    return pl.pallas_call(
        _proj_kernel,
        out_shape=jax.ShapeDtypeStruct((n, 2 * HIDDEN), jnp.float32),
        grid=(n // tile_n,),
        in_specs=[pl.BlockSpec((tile_n, HIDDEN), lambda i: (i, 0)),
                  pl.BlockSpec((HIDDEN, 2 * HIDDEN), lambda i: (0, 0))],
        out_specs=pl.BlockSpec((tile_n, 2 * HIDDEN), lambda i: (i, 0)),
        compiler_params=_cparams(("parallel",)),
    )(h, w_pack)


def edge_scatter(row2d, pre, b, scale, shift, h, *, tile_n, tile_e):
    n = h.shape[0]
    e_pad = row2d.shape[1]
    kern = functools.partial(_edge_scatter_kernel, tile_n=tile_n, tile_e=tile_e)
    return pl.pallas_call(
        kern,
        out_shape=jax.ShapeDtypeStruct((n, HIDDEN), jnp.float32),
        grid=(n // tile_n, e_pad // tile_e),
        in_specs=[
            pl.BlockSpec((1, tile_e), lambda i, j: (0, j)),        # row ids
            pl.BlockSpec((tile_e, HIDDEN), lambda i, j: (j, 0)),   # P1[row]+P2[col]
            pl.BlockSpec((1, HIDDEN), lambda i, j: (0, 0)),        # bias
            pl.BlockSpec((1, HIDDEN), lambda i, j: (0, 0)),        # BN scale
            pl.BlockSpec((1, HIDDEN), lambda i, j: (0, 0)),        # BN shift
            pl.BlockSpec((tile_n, HIDDEN), lambda i, j: (i, 0)),   # residual h
        ],
        out_specs=pl.BlockSpec((tile_n, HIDDEN), lambda i, j: (i, 0)),
        scratch_shapes=[pltpu.VMEM((tile_n, HIDDEN), jnp.float32),
                        pltpu.VMEM((tile_n, 1), jnp.float32)],
        input_output_aliases={5: 0},                               # reuse h's buffer
        compiler_params=_cparams(("parallel", "arbitrary")),
    )(row2d, pre, b, scale, shift, h)


def head(h, head_params, *, tile_n):
    n = h.shape[0]
    full_specs = [pl.BlockSpec(a.shape, lambda i: (0, 0)) for a in head_params]
    return pl.pallas_call(
        _head_kernel,
        out_shape=jax.ShapeDtypeStruct((n, 128), jnp.float32),
        grid=(n // tile_n,),
        in_specs=[pl.BlockSpec((tile_n, HIDDEN), lambda i: (i, 0))] + full_specs,
        out_specs=pl.BlockSpec((tile_n, 128), lambda i: (i, 0)),
        compiler_params=_cparams(("parallel",)),
    )(h, *head_params)


# --------------------------- parameter creation -----------------------------


def _bn_scale_shift(gamma, beta, mean, var):
    scale = gamma / jnp.sqrt(var + BN_EPS)
    shift = beta - mean * scale
    return scale, shift


def init_params(key):
    def lin(k, fin, fout):
        k1, k2 = jax.random.split(k)
        bound = 1.0 / jnp.sqrt(fin)
        w = jax.random.uniform(k1, (fin, fout), jnp.float32, -bound, bound)
        b = jax.random.uniform(k2, (fout,), jnp.float32, -bound, bound)
        return w, b

    def bn(k, f):
        k1, k2, k3 = jax.random.split(k, 3)
        gamma = 1.0 + 0.1 * jax.random.normal(k1, (f,), jnp.float32)
        beta = 0.1 * jax.random.normal(k2, (f,), jnp.float32)
        mean = 0.1 * jax.random.normal(k3, (f,), jnp.float32)
        var = jnp.ones((f,), jnp.float32)
        return _bn_scale_shift(gamma, beta, mean, var)

    keys = jax.random.split(key, 16)
    p = {}

    w1, b1 = lin(keys[0], 16, HIDDEN)
    w2, b2 = lin(keys[1], HIDDEN, HIDDEN)
    p["lc"] = (w1, b1.reshape(1, -1), w2, b2.reshape(1, -1))

    convs = []
    for i in range(NUM_LAYERS):
        kw, kb = jax.random.split(keys[2 + i])
        w, b = lin(kw, 2 * HIDDEN, HIDDEN)
        scale, shift = bn(kb, HIDDEN)
        # cat([xc, xn - xc]) @ W  ==  xc @ (W_top - W_bot) + xn @ W_bot
        w_top, w_bot = w[:HIDDEN], w[HIDDEN:]
        w_pack = jnp.concatenate([w_top - w_bot, w_bot], axis=1)   # (H, 2H)
        convs.append((w_pack, b.reshape(1, -1),
                      scale.reshape(1, -1), shift.reshape(1, -1)))
    p["convs"] = convs

    ws, bs = lin(keys[6], HIDDEN, 64)
    wc1, bc1 = lin(keys[7], 64, 32)
    wc2, bc2 = lin(keys[8], 32, CONTRASTIVE)
    ws1, bs1 = lin(keys[9], 64, 64)
    s1_scale, s1_shift = bn(keys[10], 64)
    ws2, bs2 = lin(keys[11], 64, 32)
    ws3, bs3 = lin(keys[12], 32, 1)

    # Pack the two narrow final layers into one lane-dense (32 -> 128) matmul:
    # output columns [0:8] = contrastive head, column [8] = split logit.
    wfc = jnp.zeros((32, 128), jnp.float32).at[:, :CONTRASTIVE].set(wc2)
    wfs = jnp.zeros((32, 128), jnp.float32).at[:, CONTRASTIVE:CONTRASTIVE + 1].set(ws3)
    bf = jnp.zeros((128,), jnp.float32).at[:CONTRASTIVE].set(bc2)
    bf = bf.at[CONTRASTIVE].set(bs3[0])

    p["head"] = (ws, bs.reshape(1, -1), wc1, bc1.reshape(1, -1),
                 ws1, bs1.reshape(1, -1),
                 s1_scale.reshape(1, -1), s1_shift.reshape(1, -1),
                 ws2, bs2.reshape(1, -1), wfc, wfs, bf.reshape(1, -1))
    return p


# -------------------------------- forward ----------------------------------


def net_forward(params, x, edge_index, batch):
    n = x.shape[0]
    e = edge_index.shape[1]
    row, col = edge_index[0], edge_index[1]

    tile_n = min(MAX_TILE_N, _round_up(n, 8))
    tile_e = min(MAX_TILE_E, _round_up(e, 128))
    n_pad = _round_up(n, tile_n)
    e_pad = _round_up(e, tile_e)

    x_p = jnp.pad(x.astype(jnp.float32), ((0, n_pad - n), (0, 0)))
    # Destination ids; padded edges get -1 so they match no node in the kernel.
    row_p = jnp.pad(row.astype(jnp.int32), (0, e_pad - e), constant_values=-1)
    row2d = row_p.reshape(1, e_pad)

    # lc_encode (fused Linear+ELU+Linear+ELU)
    h = lc_encode(x_p, *params["lc"], tile_n=tile_n)

    for (w_pack, b, scale, shift) in params["convs"]:
        proj = node_project(h, w_pack, tile_n=tile_n)           # (N_pad, 2H)
        p1 = proj[:, :HIDDEN]                                   # h @ (W_top - W_bot)
        p2 = proj[:, HIDDEN:]                                   # h @ W_bot
        # Per-edge pre-activation via XLA gather glue (the edge-level matmul /
        # concat of the reference is already folded into node_project).
        pre = p1[row] + p2[col]                                 # (E, H)
        pre = jnp.pad(pre, ((0, e_pad - e), (0, 0)))
        # BN(ELU(. + b)), scatter-mean onto `row`, + residual, all in one kernel.
        h = edge_scatter(row2d, pre, b, scale, shift, h,
                         tile_n=tile_n, tile_e=tile_e)

    slab = head(h, params["head"], tile_n=tile_n)               # (N_pad, 128)
    contrastive_out = slab[:n, :CONTRASTIVE]
    split_logit = slab[:n, CONTRASTIVE:CONTRASTIVE + 1]
    return contrastive_out, split_logit, batch


# TODO(synk): Dropout / BatchNorm training-mode statistics are not modeled;
# this is the eval-mode forward pass (Dropout = identity, BN running stats).


if __name__ == "__main__":
    key = jax.random.PRNGKey(0)
    kp, kx, kr, kc = jax.random.split(key, 4)

    N, E = 32, 64
    params = init_params(kp)
    x = jax.random.normal(kx, (N, 16), jnp.float32)
    row = jax.random.randint(kr, (E,), 0, N, dtype=jnp.int32)
    col = jax.random.randint(kc, (E,), 0, N, dtype=jnp.int32)
    edge_index = jnp.stack([row, col])
    batch = jnp.zeros((N,), jnp.int32)

    fwd = jax.jit(net_forward)
    contrastive_out, split_logit, batch_out = fwd(params, x, edge_index, batch)
    jax.block_until_ready((contrastive_out, split_logit, batch_out))

    assert contrastive_out.shape == (N, CONTRASTIVE)
    assert split_logit.shape == (N, 1)
    assert batch_out.shape == (N,)
    assert bool(jnp.all(jnp.isfinite(contrastive_out)))
    assert bool(jnp.all(jnp.isfinite(split_logit)))
    print("KERNEL_OK")
</pallas_src>

<mosaic_0001>
module attributes {stable_mosaic.version = 11 : i64} {
  func.func @_lc_kernel(%arg0: i32, %arg1: memref<32x16xf32, #tpu.memory_space<vmem>>, %arg2: memref<16x64xf32, #tpu.memory_space<vmem>>, %arg3: memref<1x64xf32, #tpu.memory_space<vmem>>, %arg4: memref<64x64xf32, #tpu.memory_space<vmem>>, %arg5: memref<1x64xf32, #tpu.memory_space<vmem>>, %arg6: memref<32x64xf32, #tpu.memory_space<vmem>>) attributes {dimension_semantics = [#tpu.dimension_semantics<parallel>], iteration_bounds = array<i64: 1>, scalar_prefetch = 0 : i64, scratch_operands = 0 : i64, tpu.core_type = #tpu.core_type<tc>, window_params = [{transform_indices = @transform_0, window_bounds = array<i64: 32, 16>}, {pipeline_mode = #tpu.pipeline_mode<synchronous>, transform_indices = @transform_1, window_bounds = array<i64: 16, 64>}, {pipeline_mode = #tpu.pipeline_mode<synchronous>, transform_indices = @transform_2, window_bounds = array<i64: 1, 64>}, {pipeline_mode = #tpu.pipeline_mode<synchronous>, transform_indices = @transform_3, window_bounds = array<i64: 64, 64>}, {pipeline_mode = #tpu.pipeline_mode<synchronous>, transform_indices = @transform_4, window_bounds = array<i64: 1, 64>}, {transform_indices = @transform_5, window_bounds = array<i64: 32, 64>}]} {
    %c0 = arith.constant 0 : index
    %c0_0 = arith.constant 0 : index
    %0 = vector.load %arg1[%c0, %c0_0] : memref<32x16xf32, #tpu.memory_space<vmem>>, vector<32x16xf32>
    %c0_1 = arith.constant 0 : index
    %c0_2 = arith.constant 0 : index
    %1 = vector.load %arg2[%c0_1, %c0_2] : memref<16x64xf32, #tpu.memory_space<vmem>>, vector<16x64xf32>
    %2 = arith.truncf %0 : vector<32x16xf32> to vector<32x16xbf16>
    %3 = arith.truncf %1 : vector<16x64xf32> to vector<16x64xbf16>
    %cst = arith.constant dense<0.000000e+00> : vector<32x64xf32>
    %4 = tpu.matmul %2, %3, %cst {dimension_numbers = #tpu.dot_dimension_numbers<[1], [0], [0], [1], [0, 0, 1, 1], [], []>} : vector<32x16xbf16>, vector<16x64xbf16>, vector<32x64xf32> -> vector<32x64xf32>
    %c0_3 = arith.constant 0 : index
    %c0_4 = arith.constant 0 : index
    %5 = vector.load %arg3[%c0_3, %c0_4] : memref<1x64xf32, #tpu.memory_space<vmem>>, vector<1x64xf32>
    %6 = vector.broadcast %5 : vector<1x64xf32> to vector<32x64xf32>
    %7 = arith.addf %4, %6 : vector<32x64xf32>
    %cst_5 = arith.constant 0.000000e+00 : f32
    %8 = vector.broadcast %cst_5 : f32 to vector<32x64xf32>
    %9 = arith.cmpf ogt, %7, %8 : vector<32x64xf32>
    %cst_6 = arith.constant 0.000000e+00 : f32
    %10 = vector.broadcast %cst_6 : f32 to vector<32x64xf32>
    %11 = arith.minimumf %7, %10 : vector<32x64xf32>
    %12 = math.exp %11 : vector<32x64xf32>
    %cst_7 = arith.constant 1.000000e+00 : f32
    %13 = vector.broadcast %cst_7 : f32 to vector<32x64xf32>
    %14 = arith.subf %12, %13 : vector<32x64xf32>
    %15 = arith.select %9, %7, %14 : vector<32x64xi1>, vector<32x64xf32>
    %c0_8 = arith.constant 0 : index
    %c0_9 = arith.constant 0 : index
    %16 = vector.load %arg4[%c0_8, %c0_9] : memref<64x64xf32, #tpu.memory_space<vmem>>, vector<64x64xf32>
    %17 = arith.truncf %15 : vector<32x64xf32> to vector<32x64xbf16>
    %18 = arith.truncf %16 : vector<64x64xf32> to vector<64x64xbf16>
    %cst_10 = arith.constant dense<0.000000e+00> : vector<32x64xf32>
    %19 = tpu.matmul %17, %18, %cst_10 {dimension_numbers = #tpu.dot_dimension_numbers<[1], [0], [0], [1], [0, 0, 1, 1], [], []>} : vector<32x64xbf16>, vector<64x64xbf16>, vector<32x64xf32> -> vector<32x64xf32>
    %c0_11 = arith.constant 0 : index
    %c0_12 = arith.constant 0 : index
    %20 = vector.load %arg5[%c0_11, %c0_12] : memref<1x64xf32, #tpu.memory_space<vmem>>, vector<1x64xf32>
    %21 = vector.broadcast %20 : vector<1x64xf32> to vector<32x64xf32>
    %22 = arith.addf %19, %21 : vector<32x64xf32>
    %cst_13 = arith.constant 0.000000e+00 : f32
    %23 = vector.broadcast %cst_13 : f32 to vector<32x64xf32>
    %24 = arith.cmpf ogt, %22, %23 : vector<32x64xf32>
    %cst_14 = arith.constant 0.000000e+00 : f32
    %25 = vector.broadcast %cst_14 : f32 to vector<32x64xf32>
    %26 = arith.minimumf %22, %25 : vector<32x64xf32>
    %27 = math.exp %26 : vector<32x64xf32>
    %cst_15 = arith.constant 1.000000e+00 : f32
    %28 = vector.broadcast %cst_15 : f32 to vector<32x64xf32>
    %29 = arith.subf %27, %28 : vector<32x64xf32>
    %30 = arith.select %24, %22, %29 : vector<32x64xi1>, vector<32x64xf32>
    %c0_16 = arith.constant 0 : index
    %c0_17 = arith.constant 0 : index
    %31 = vector.load %arg6[%c0_16, %c0_17] : memref<32x64xf32, #tpu.memory_space<vmem>>, vector<32x64xf32>
    tpu.vector_store %arg6[%c0_16, %c0_17], %30 {strides = array<i32>} : memref<32x64xf32, #tpu.memory_space<vmem>>, vector<32x64xf32>,
    return
  }
  func.func @transform_0(%arg0: i32) -> (i32, i32) {
    %c0_i32 = arith.constant 0 : i32
    %c0_i32_0 = arith.constant 0 : i32
    return %arg0, %c0_i32 : i32, i32
  }
  func.func @transform_1(%arg0: i32) -> (i32, i32) {
    %c0_i32 = arith.constant 0 : i32
    %c0_i32_0 = arith.constant 0 : i32
    %c0_i32_1 = arith.constant 0 : i32
    return %c0_i32, %c0_i32_0 : i32, i32
  }
  func.func @transform_2(%arg0: i32) -> (i32, i32) {
    %c0_i32 = arith.constant 0 : i32
    %c0_i32_0 = arith.constant 0 : i32
    %c0_i32_1 = arith.constant 0 : i32
    return %c0_i32, %c0_i32_0 : i32, i32
  }
  func.func @transform_3(%arg0: i32) -> (i32, i32) {
    %c0_i32 = arith.constant 0 : i32
    %c0_i32_0 = arith.constant 0 : i32
    %c0_i32_1 = arith.constant 0 : i32
    return %c0_i32, %c0_i32_0 : i32, i32
  }
  func.func @transform_4(%arg0: i32) -> (i32, i32) {
    %c0_i32 = arith.constant 0 : i32
    %c0_i32_0 = arith.constant 0 : i32
    %c0_i32_1 = arith.constant 0 : i32
    return %c0_i32, %c0_i32_0 : i32, i32
  }
  func.func @transform_5(%arg0: i32) -> (i32, i32) {
    %c0_i32 = arith.constant 0 : i32
    %c0_i32_0 = arith.constant 0 : i32
    return %arg0, %c0_i32 : i32, i32
  }
}

module attributes {stable_mosaic.version = 11 : i64} {
  func.func @_proj_kernel(%arg0: i32, %arg1: memref<32x64xf32, #tpu.memory_space<vmem>>, %arg2: memref<64x128xf32, #tpu.memory_space<vmem>>, %arg3: memref<32x128xf32, #tpu.memory_space<vmem>>) attributes {dimension_semantics = [#tpu.dimension_semantics<parallel>], iteration_bounds = array<i64: 1>, scalar_prefetch = 0 : i64, scratch_operands = 0 : i64, tpu.core_type = #tpu.core_type<tc>, window_params = [{transform_indices = @transform_0, window_bounds = array<i64: 32, 64>}, {pipeline_mode = #tpu.pipeline_mode<synchronous>, transform_indices = @transform_1, window_bounds = array<i64: 64, 128>}, {transform_indices = @transform_2, window_bounds = array<i64: 32, 128>}]} {
    %c0 = arith.constant 0 : index
    %c0_0 = arith.constant 0 : index
    %0 = vector.load %arg1[%c0, %c0_0] : memref<32x64xf32, #tpu.memory_space<vmem>>, vector<32x64xf32>
    %c0_1 = arith.constant 0 : index
    %c0_2 = arith.constant 0 : index
    %1 = vector.load %arg2[%c0_1, %c0_2] : memref<64x128xf32, #tpu.memory_space<vmem>>, vector<64x128xf32>
    %2 = arith.truncf %0 : vector<32x64xf32> to vector<32x64xbf16>
    %3 = arith.truncf %1 : vector<64x128xf32> to vector<64x128xbf16>
    %cst = arith.constant dense<0.000000e+00> : vector<32x128xf32>
    %4 = tpu.matmul %2, %3, %cst {dimension_numbers = #tpu.dot_dimension_numbers<[1], [0], [0], [1], [0, 0, 1, 1], [], []>} : vector<32x64xbf16>, vector<64x128xbf16>, vector<32x128xf32> -> vector<32x128xf32>
    %c0_3 = arith.constant 0 : index
    %c0_4 = arith.constant 0 : index
    %5 = vector.load %arg3[%c0_3, %c0_4] : memref<32x128xf32, #tpu.memory_space<vmem>>, vector<32x128xf32>
    tpu.vector_store %arg3[%c0_3, %c0_4], %4 {strides = array<i32>} : memref<32x128xf32, #tpu.memory_space<vmem>>, vector<32x128xf32>,
    return
  }
  func.func @transform_0(%arg0: i32) -> (i32, i32) {
    %c0_i32 = arith.constant 0 : i32
    %c0_i32_0 = arith.constant 0 : i32
    return %arg0, %c0_i32 : i32, i32
  }
  func.func @transform_1(%arg0: i32) -> (i32, i32) {
    %c0_i32 = arith.constant 0 : i32
    %c0_i32_0 = arith.constant 0 : i32
    %c0_i32_1 = arith.constant 0 : i32
    return %c0_i32, %c0_i32_0 : i32, i32
  }
  func.func @transform_2(%arg0: i32) -> (i32, i32) {
    %c0_i32 = arith.constant 0 : i32
    %c0_i32_0 = arith.constant 0 : i32
    return %arg0, %c0_i32 : i32, i32
  }
}

module attributes {stable_mosaic.version = 11 : i64} {
  func.func @_edge_scatter_kernel(%arg0: i32, %arg1: i32, %arg2: memref<1x128xi32, #tpu.memory_space<vmem>>, %arg3: memref<128x64xf32, #tpu.memory_space<vmem>>, %arg4: memref<1x64xf32, #tpu.memory_space<vmem>>, %arg5: memref<1x64xf32, #tpu.memory_space<vmem>>, %arg6: memref<1x64xf32, #tpu.memory_space<vmem>>, %arg7: memref<32x64xf32, #tpu.memory_space<vmem>>, %arg8: memref<32x64xf32, #tpu.memory_space<vmem>>, %arg9: memref<32x64xf32, #tpu.memory_space<vmem>>, %arg10: memref<32x1xf32, #tpu.memory_space<vmem>>) attributes {dimension_semantics = [#tpu.dimension_semantics<parallel>, #tpu.dimension_semantics<arbitrary>], iteration_bounds = array<i64: 1, 1>, scalar_prefetch = 0 : i64, scratch_operands = 2 : i64, tpu.core_type = #tpu.core_type<tc>, window_params = [{transform_indices = @transform_0, window_bounds = array<i64: 1, 128>}, {transform_indices = @transform_1, window_bounds = array<i64: 128, 64>}, {pipeline_mode = #tpu.pipeline_mode<synchronous>, transform_indices = @transform_2, window_bounds = array<i64: 1, 64>}, {pipeline_mode = #tpu.pipeline_mode<synchronous>, transform_indices = @transform_3, window_bounds = array<i64: 1, 64>}, {pipeline_mode = #tpu.pipeline_mode<synchronous>, transform_indices = @transform_4, window_bounds = array<i64: 1, 64>}, {transform_indices = @transform_5, window_bounds = array<i64: 32, 64>}, {transform_indices = @transform_6, window_bounds = array<i64: 32, 64>}]} {
    %c0_i32 = arith.constant 0 : i32
    %0 = arith.cmpi eq, %arg1, %c0_i32 : i32
    %1 = arith.extui %0 : i1 to i32
    %c0_i32_0 = arith.constant 0 : i32
    %2 = arith.cmpi ne, %1, %c0_i32_0 : i32
    scf.if %2 {
      %cst_24 = arith.constant 0.000000e+00 : f32
      %46 = vector.broadcast %cst_24 : f32 to vector<32x64xf32>
      %c0_25 = arith.constant 0 : index
      %c0_26 = arith.constant 0 : index
      %47 = vector.load %arg9[%c0_25, %c0_26] : memref<32x64xf32, #tpu.memory_space<vmem>>, vector<32x64xf32>
      tpu.vector_store %arg9[%c0_25, %c0_26], %46 {strides = array<i32>} : memref<32x64xf32, #tpu.memory_space<vmem>>, vector<32x64xf32>,
      %cst_27 = arith.constant 0.000000e+00 : f32
      %48 = vector.broadcast %cst_27 : f32 to vector<32x1xf32>
      %c0_28 = arith.constant 0 : index
      %c0_29 = arith.constant 0 : index
      %49 = vector.load %arg10[%c0_28, %c0_29] : memref<32x1xf32, #tpu.memory_space<vmem>>, vector<32x1xf32>
      tpu.vector_store %arg10[%c0_28, %c0_29], %48 {strides = array<i32>} : memref<32x1xf32, #tpu.memory_space<vmem>>, vector<32x1xf32>,
    } else {
    }
    %c0 = arith.constant 0 : index
    %c0_1 = arith.constant 0 : index
    %3 = vector.load %arg3[%c0, %c0_1] : memref<128x64xf32, #tpu.memory_space<vmem>>, vector<128x64xf32>
    %c0_2 = arith.constant 0 : index
    %c0_3 = arith.constant 0 : index
    %4 = vector.load %arg4[%c0_2, %c0_3] : memref<1x64xf32, #tpu.memory_space<vmem>>, vector<1x64xf32>
    %5 = vector.broadcast %4 : vector<1x64xf32> to vector<128x64xf32>
    %6 = arith.addf %3, %5 : vector<128x64xf32>
    %cst = arith.constant 0.000000e+00 : f32
    %7 = vector.broadcast %cst : f32 to vector<128x64xf32>
    %8 = arith.cmpf ogt, %6, %7 : vector<128x64xf32>
    %cst_4 = arith.constant 0.000000e+00 : f32
    %9 = vector.broadcast %cst_4 : f32 to vector<128x64xf32>
    %10 = arith.minimumf %6, %9 : vector<128x64xf32>
    %11 = math.exp %10 : vector<128x64xf32>
    %cst_5 = arith.constant 1.000000e+00 : f32
    %12 = vector.broadcast %cst_5 : f32 to vector<128x64xf32>
    %13 = arith.subf %11, %12 : vector<128x64xf32>
    %14 = arith.select %8, %6, %13 : vector<128x64xi1>, vector<128x64xf32>
    %c0_6 = arith.constant 0 : index
    %c0_7 = arith.constant 0 : index
    %15 = vector.load %arg5[%c0_6, %c0_7] : memref<1x64xf32, #tpu.memory_space<vmem>>, vector<1x64xf32>
    %16 = vector.broadcast %15 : vector<1x64xf32> to vector<128x64xf32>
    %17 = arith.mulf %14, %16 : vector<128x64xf32>
    %c0_8 = arith.constant 0 : index
    %c0_9 = arith.constant 0 : index
    %18 = vector.load %arg6[%c0_8, %c0_9] : memref<1x64xf32, #tpu.memory_space<vmem>>, vector<1x64xf32>
    %19 = vector.broadcast %18 : vector<1x64xf32> to vector<128x64xf32>
    %20 = arith.addf %17, %19 : vector<128x64xf32>
    %c32_i32 = arith.constant 32 : i32
    %21 = arith.muli %arg0, %c32_i32 : i32
    %22 = tpu.iota {dimensions = array<i32: 0>} : vector<32x128xi32>
    %23 = vector.broadcast %21 : i32 to vector<32x128xi32>
    %24 = arith.addi %23, %22 : vector<32x128xi32>
    %c0_10 = arith.constant 0 : index
    %c0_11 = arith.constant 0 : index
    %25 = vector.load %arg2[%c0_10, %c0_11] : memref<1x128xi32, #tpu.memory_space<vmem>>, vector<1x128xi32>
    %26 = vector.broadcast %25 : vector<1x128xi32> to vector<32x128xi32>
    %27 = arith.cmpi eq, %24, %26 : vector<32x128xi32>
    %28 = arith.extui %27 : vector<32x128xi1> to vector<32x128xi32>
    %29 = arith.sitofp %28 : vector<32x128xi32> to vector<32x128xf32>
    %30 = arith.truncf %29 : vector<32x128xf32> to vector<32x128xbf16>
    %c0_12 = arith.constant 0 : index
    %c0_13 = arith.constant 0 : index
    %31 = vector.load %arg9[%c0_12, %c0_13] : memref<32x64xf32, #tpu.memory_space<vmem>>, vector<32x64xf32>
    %32 = arith.truncf %20 : vector<128x64xf32> to vector<128x64xbf16>
    %cst_14 = arith.constant dense<0.000000e+00> : vector<32x64xf32>
    %33 = tpu.matmul %30, %32, %cst_14 {dimension_numbers = #tpu.dot_dimension_numbers<[1], [0], [0], [1], [0, 0, 1, 1], [], []>} : vector<32x128xbf16>, vector<128x64xbf16>, vector<32x64xf32> -> vector<32x64xf32>
    %34 = arith.addf %31, %33 : vector<32x64xf32>
    %c0_15 = arith.constant 0 : index
    %c0_16 = arith.constant 0 : index
    %35 = vector.load %arg9[%c0_15, %c0_16] : memref<32x64xf32, #tpu.memory_space<vmem>>, vector<32x64xf32>
    tpu.vector_store %arg9[%c0_15, %c0_16], %34 {strides = array<i32>} : memref<32x64xf32, #tpu.memory_space<vmem>>, vector<32x64xf32>,
    %c0_17 = arith.constant 0 : index
    %c0_18 = arith.constant 0 : index
    %36 = vector.load %arg10[%c0_17, %c0_18] : memref<32x1xf32, #tpu.memory_space<vmem>>, vector<32x1xf32>
    %37 = arith.extui %27 : vector<32x128xi1> to vector<32x128xi32>
    %38 = arith.sitofp %37 : vector<32x128xi32> to vector<32x128xf32>
    %cst_19 = arith.constant dense<0.000000e+00> : vector<32xf32>
    %39 = vector.multi_reduction <add>, %38, %cst_19 [1] : vector<32x128xf32> to vector<32xf32>
    %40 = vector.shape_cast %39 : vector<32xf32> to vector<32x1xf32>
    %41 = arith.addf %36, %40 : vector<32x1xf32>
    %c0_20 = arith.constant 0 : index
    %c0_21 = arith.constant 0 : index
    %42 = vector.load %arg10[%c0_20, %c0_21] : memref<32x1xf32, #tpu.memory_space<vmem>>, vector<32x1xf32>
    tpu.vector_store %arg10[%c0_20, %c0_21], %41 {strides = array<i32>} : memref<32x1xf32, #tpu.memory_space<vmem>>, vector<32x1xf32>,
    %c0_i32_22 = arith.constant 0 : i32
    %43 = arith.cmpi eq, %arg1, %c0_i32_22 : i32
    %44 = arith.extui %43 : i1 to i32
    %c0_i32_23 = arith.constant 0 : i32
    %45 = arith.cmpi ne, %44, %c0_i32_23 : i32
    scf.if %45 {
      %c0_24 = arith.constant 0 : index
      %c0_25 = arith.constant 0 : index
      %46 = vector.load %arg10[%c0_24, %c0_25] : memref<32x1xf32, #tpu.memory_space<vmem>>, vector<32x1xf32>
      %cst_26 = arith.constant 1.000000e+00 : f32
      %47 = vector.broadcast %cst_26 : f32 to vector<32x1xf32>
      %48 = arith.maximumf %46, %47 : vector<32x1xf32>
      %c0_27 = arith.constant 0 : index
      %c0_28 = arith.constant 0 : index
      %49 = vector.load %arg9[%c0_27, %c0_28] : memref<32x64xf32, #tpu.memory_space<vmem>>, vector<32x64xf32>
      %50 = vector.broadcast %48 : vector<32x1xf32> to vector<32x64xf32>
      %51 = arith.divf %49, %50 : vector<32x64xf32>
      %c0_29 = arith.constant 0 : index
      %c0_30 = arith.constant 0 : index
      %52 = vector.load %arg7[%c0_29, %c0_30] : memref<32x64xf32, #tpu.memory_space<vmem>>, vector<32x64xf32>
      %53 = arith.addf %51, %52 : vector<32x64xf32>
      %c0_31 = arith.constant 0 : index
      %c0_32 = arith.constant 0 : index
      %54 = vector.load %arg8[%c0_31, %c0_32] : memref<32x64xf32, #tpu.memory_space<vmem>>, vector<32x64xf32>
      tpu.vector_store %arg8[%c0_31, %c0_32], %53 {strides = array<i32>} : memref<32x64xf32, #tpu.memory_space<vmem>>, vector<32x64xf32>,
    } else {
    }
    return
  }
  func.func @transform_0(%arg0: i32, %arg1: i32) -> (i32, i32) {
    %c0_i32 = arith.constant 0 : i32
    %c0_i32_0 = arith.constant 0 : i32
    return %c0_i32, %arg1 : i32, i32
  }
  func.func @transform_1(%arg0: i32, %arg1: i32) -> (i32, i32) {
    %c0_i32 = arith.constant 0 : i32
    %c0_i32_0 = arith.constant 0 : i32
    return %arg1, %c0_i32 : i32, i32
  }
  func.func @transform_2(%arg0: i32, %arg1: i32) -> (i32, i32) {
    %c0_i32 = arith.constant 0 : i32
    %c0_i32_0 = arith.constant 0 : i32
    %c0_i32_1 = arith.constant 0 : i32
    return %c0_i32, %c0_i32_0 : i32, i32
  }
  func.func @transform_3(%arg0: i32, %arg1: i32) -> (i32, i32) {
    %c0_i32 = arith.constant 0 : i32
    %c0_i32_0 = arith.constant 0 : i32
    %c0_i32_1 = arith.constant 0 : i32
    return %c0_i32, %c0_i32_0 : i32, i32
  }
  func.func @transform_4(%arg0: i32, %arg1: i32) -> (i32, i32) {
    %c0_i32 = arith.constant 0 : i32
    %c0_i32_0 = arith.constant 0 : i32
    %c0_i32_1 = arith.constant 0 : i32
    return %c0_i32, %c0_i32_0 : i32, i32
  }
  func.func @transform_5(%arg0: i32, %arg1: i32) -> (i32, i32) {
    %c0_i32 = arith.constant 0 : i32
    %c0_i32_0 = arith.constant 0 : i32
    return %arg0, %c0_i32 : i32, i32
  }
  func.func @transform_6(%arg0: i32, %arg1: i32) -> (i32, i32) {
    %c0_i32 = arith.constant 0 : i32
    %c0_i32_0 = arith.constant 0 : i32
    return %arg0, %c0_i32 : i32, i32
  }
}

module attributes {stable_mosaic.version = 11 : i64} {
  func.func @_head_kernel(%arg0: i32, %arg1: memref<32x64xf32, #tpu.memory_space<vmem>>, %arg2: memref<64x64xf32, #tpu.memory_space<vmem>>, %arg3: memref<1x64xf32, #tpu.memory_space<vmem>>, %arg4: memref<64x32xf32, #tpu.memory_space<vmem>>, %arg5: memref<1x32xf32, #tpu.memory_space<vmem>>, %arg6: memref<64x64xf32, #tpu.memory_space<vmem>>, %arg7: memref<1x64xf32, #tpu.memory_space<vmem>>, %arg8: memref<1x64xf32, #tpu.memory_space<vmem>>, %arg9: memref<1x64xf32, #tpu.memory_space<vmem>>, %arg10: memref<64x32xf32, #tpu.memory_space<vmem>>, %arg11: memref<1x32xf32, #tpu.memory_space<vmem>>, %arg12: memref<32x128xf32, #tpu.memory_space<vmem>>, %arg13: memref<32x128xf32, #tpu.memory_space<vmem>>, %arg14: memref<1x128xf32, #tpu.memory_space<vmem>>, %arg15: memref<32x128xf32, #tpu.memory_space<vmem>>) attributes {dimension_semantics = [#tpu.dimension_semantics<parallel>], iteration_bounds = array<i64: 1>, scalar_prefetch = 0 : i64, scratch_operands = 0 : i64, tpu.core_type = #tpu.core_type<tc>, window_params = [{transform_indices = @transform_0, window_bounds = array<i64: 32, 64>}, {pipeline_mode = #tpu.pipeline_mode<synchronous>, transform_indices = @transform_1, window_bounds = array<i64: 64, 64>}, {pipeline_mode = #tpu.pipeline_mode<synchronous>, transform_indices = @transform_2, window_bounds = array<i64: 1, 64>}, {pipeline_mode = #tpu.pipeline_mode<synchronous>, transform_indices = @transform_3, window_bounds = array<i64: 64, 32>}, {pipeline_mode = #tpu.pipeline_mode<synchronous>, transform_indices = @transform_4, window_bounds = array<i64: 1, 32>}, {pipeline_mode = #tpu.pipeline_mode<synchronous>, transform_indices = @transform_5, window_bounds = array<i64: 64, 64>}, {pipeline_mode = #tpu.pipeline_mode<synchronous>, transform_indices = @transform_6, window_bounds = array<i64: 1, 64>}, {pipeline_mode = #tpu.pipeline_mode<synchronous>, transform_indices = @transform_7, window_bounds = array<i64: 1, 64>}, {pipeline_mode = #tpu.pipeline_mode<synchronous>, transform_indices = @transform_8, window_bounds = array<i64: 1, 64>}, {pipeline_mode = #tpu.pipeline_mode<synchronous>, transform_indices = @transform_9, window_bounds = array<i64: 64, 32>}, {pipeline_mode = #tpu.pipeline_mode<synchronous>, transform_indices = @transform_10, window_bounds = array<i64: 1, 32>}, {pipeline_mode = #tpu.pipeline_mode<synchronous>, transform_indices = @transform_11, window_bounds = array<i64: 32, 128>}, {pipeline_mode = #tpu.pipeline_mode<synchronous>, transform_indices = @transform_12, window_bounds = array<i64: 32, 128>}, {pipeline_mode = #tpu.pipeline_mode<synchronous>, transform_indices = @transform_13, window_bounds = array<i64: 1, 128>}, {transform_indices = @transform_14, window_bounds = array<i64: 32, 128>}]} {
    %c0 = arith.constant 0 : index
    %c0_0 = arith.constant 0 : index
    %0 = vector.load %arg1[%c0, %c0_0] : memref<32x64xf32, #tpu.memory_space<vmem>>, vector<32x64xf32>
    %c0_1 = arith.constant 0 : index
    %c0_2 = arith.constant 0 : index
    %1 = vector.load %arg2[%c0_1, %c0_2] : memref<64x64xf32, #tpu.memory_space<vmem>>, vector<64x64xf32>
    %2 = arith.truncf %0 : vector<32x64xf32> to vector<32x64xbf16>
    %3 = arith.truncf %1 : vector<64x64xf32> to vector<64x64xbf16>
    %cst = arith.constant dense<0.000000e+00> : vector<32x64xf32>
    %4 = tpu.matmul %2, %3, %cst {dimension_numbers = #tpu.dot_dimension_numbers<[1], [0], [0], [1], [0, 0, 1, 1], [], []>} : vector<32x64xbf16>, vector<64x64xbf16>, vector<32x64xf32> -> vector<32x64xf32>
    %c0_3 = arith.constant 0 : index
    %c0_4 = arith.constant 0 : index
    %5 = vector.load %arg3[%c0_3, %c0_4] : memref<1x64xf32, #tpu.memory_space<vmem>>, vector<1x64xf32>
    %6 = vector.broadcast %5 : vector<1x64xf32> to vector<32x64xf32>
    %7 = arith.addf %4, %6 : vector<32x64xf32>
    %cst_5 = arith.constant 0.000000e+00 : f32
    %8 = vector.broadcast %cst_5 : f32 to vector<32x64xf32>
    %9 = arith.cmpf ogt, %7, %8 : vector<32x64xf32>
    %cst_6 = arith.constant 0.000000e+00 : f32
    %10 = vector.broadcast %cst_6 : f32 to vector<32x64xf32>
    %11 = arith.minimumf %7, %10 : vector<32x64xf32>
    %12 = math.exp %11 : vector<32x64xf32>
    %cst_7 = arith.constant 1.000000e+00 : f32
    %13 = vector.broadcast %cst_7 : f32 to vector<32x64xf32>
    %14 = arith.subf %12, %13 : vector<32x64xf32>
    %15 = arith.select %9, %7, %14 : vector<32x64xi1>, vector<32x64xf32>
    %c0_8 = arith.constant 0 : index
    %c0_9 = arith.constant 0 : index
    %16 = vector.load %arg4[%c0_8, %c0_9] : memref<64x32xf32, #tpu.memory_space<vmem>>, vector<64x32xf32>
    %17 = arith.truncf %15 : vector<32x64xf32> to vector<32x64xbf16>
    %18 = arith.truncf %16 : vector<64x32xf32> to vector<64x32xbf16>
    %cst_10 = arith.constant dense<0.000000e+00> : vector<32x32xf32>
    %19 = tpu.matmul %17, %18, %cst_10 {dimension_numbers = #tpu.dot_dimension_numbers<[1], [0], [0], [1], [0, 0, 1, 1], [], []>} : vector<32x64xbf16>, vector<64x32xbf16>, vector<32x32xf32> -> vector<32x32xf32>
    %c0_11 = arith.constant 0 : index
    %c0_12 = arith.constant 0 : index
    %20 = vector.load %arg5[%c0_11, %c0_12] : memref<1x32xf32, #tpu.memory_space<vmem>>, vector<1x32xf32>
    %21 = vector.broadcast %20 : vector<1x32xf32> to vector<32x32xf32>
    %22 = arith.addf %19, %21 : vector<32x32xf32>
    %cst_13 = arith.constant 0.000000e+00 : f32
    %23 = vector.broadcast %cst_13 : f32 to vector<32x32xf32>
    %24 = arith.cmpf ogt, %22, %23 : vector<32x32xf32>
    %cst_14 = arith.constant 0.000000e+00 : f32
    %25 = vector.broadcast %cst_14 : f32 to vector<32x32xf32>
    %26 = arith.minimumf %22, %25 : vector<32x32xf32>
    %27 = math.exp %26 : vector<32x32xf32>
    %cst_15 = arith.constant 1.000000e+00 : f32
    %28 = vector.broadcast %cst_15 : f32 to vector<32x32xf32>
    %29 = arith.subf %27, %28 : vector<32x32xf32>
    %30 = arith.select %24, %22, %29 : vector<32x32xi1>, vector<32x32xf32>
    %c0_16 = arith.constant 0 : index
    %c0_17 = arith.constant 0 : index
    %31 = vector.load %arg6[%c0_16, %c0_17] : memref<64x64xf32, #tpu.memory_space<vmem>>, vector<64x64xf32>
    %32 = arith.truncf %15 : vector<32x64xf32> to vector<32x64xbf16>
    %33 = arith.truncf %31 : vector<64x64xf32> to vector<64x64xbf16>
    %cst_18 = arith.constant dense<0.000000e+00> : vector<32x64xf32>
    %34 = tpu.matmul %32, %33, %cst_18 {dimension_numbers = #tpu.dot_dimension_numbers<[1], [0], [0], [1], [0, 0, 1, 1], [], []>} : vector<32x64xbf16>, vector<64x64xbf16>, vector<32x64xf32> -> vector<32x64xf32>
    %c0_19 = arith.constant 0 : index
    %c0_20 = arith.constant 0 : index
    %35 = vector.load %arg7[%c0_19, %c0_20] : memref<1x64xf32, #tpu.memory_space<vmem>>, vector<1x64xf32>
    %36 = vector.broadcast %35 : vector<1x64xf32> to vector<32x64xf32>
    %37 = arith.addf %34, %36 : vector<32x64xf32>
    %cst_21 = arith.constant 0.000000e+00 : f32
    %38 = vector.broadcast %cst_21 : f32 to vector<32x64xf32>
    %39 = arith.cmpf ogt, %37, %38 : vector<32x64xf32>
    %cst_22 = arith.constant 0.000000e+00 : f32
    %40 = vector.broadcast %cst_22 : f32 to vector<32x64xf32>
    %41 = arith.minimumf %37, %40 : vector<32x64xf32>
    %42 = math.exp %41 : vector<32x64xf32>
    %cst_23 = arith.constant 1.000000e+00 : f32
    %43 = vector.broadcast %cst_23 : f32 to vector<32x64xf32>
    %44 = arith.subf %42, %43 : vector<32x64xf32>
    %45 = arith.select %39, %37, %44 : vector<32x64xi1>, vector<32x64xf32>
    %c0_24 = arith.constant 0 : index
    %c0_25 = arith.constant 0 : index
    %46 = vector.load %arg8[%c0_24, %c0_25] : memref<1x64xf32, #tpu.memory_space<vmem>>, vector<1x64xf32>
    %47 = vector.broadcast %46 : vector<1x64xf32> to vector<32x64xf32>
    %48 = arith.mulf %45, %47 : vector<32x64xf32>
    %c0_26 = arith.constant 0 : index
    %c0_27 = arith.constant 0 : index
    %49 = vector.load %arg9[%c0_26, %c0_27] : memref<1x64xf32, #tpu.memory_space<vmem>>, vector<1x64xf32>
    %50 = vector.broadcast %49 : vector<1x64xf32> to vector<32x64xf32>
    %51 = arith.addf %48, %50 : vector<32x64xf32>
    %c0_28 = arith.constant 0 : index
    %c0_29 = arith.constant 0 : index
    %52 = vector.load %arg10[%c0_28, %c0_29] : memref<64x32xf32, #tpu.memory_space<vmem>>, vector<64x32xf32>
    %53 = arith.truncf %51 : vector<32x64xf32> to vector<32x64xbf16>
    %54 = arith.truncf %52 : vector<64x32xf32> to vector<64x32xbf16>
    %cst_30 = arith.constant dense<0.000000e+00> : vector<32x32xf32>
    %55 = tpu.matmul %53, %54, %cst_30 {dimension_numbers = #tpu.dot_dimension_numbers<[1], [0], [0], [1], [0, 0, 1, 1], [], []>} : vector<32x64xbf16>, vector<64x32xbf16>, vector<32x32xf32> -> vector<32x32xf32>
    %c0_31 = arith.constant 0 : index
    %c0_32 = arith.constant 0 : index
    %56 = vector.load %arg11[%c0_31, %c0_32] : memref<1x32xf32, #tpu.memory_space<vmem>>, vector<1x32xf32>
    %57 = vector.broadcast %56 : vector<1x32xf32> to vector<32x32xf32>
    %58 = arith.addf %55, %57 : vector<32x32xf32>
    %cst_33 = arith.constant 0.000000e+00 : f32
    %59 = vector.broadcast %cst_33 : f32 to vector<32x32xf32>
    %60 = arith.cmpf ogt, %58, %59 : vector<32x32xf32>
    %cst_34 = arith.constant 0.000000e+00 : f32
    %61 = vector.broadcast %cst_34 : f32 to vector<32x32xf32>
    %62 = arith.minimumf %58, %61 : vector<32x32xf32>
    %63 = math.exp %62 : vector<32x32xf32>
    %cst_35 = arith.constant 1.000000e+00 : f32
    %64 = vector.broadcast %cst_35 : f32 to vector<32x32xf32>
    %65 = arith.subf %63, %64 : vector<32x32xf32>
    %66 = arith.select %60, %58, %65 : vector<32x32xi1>, vector<32x32xf32>
    %c0_36 = arith.constant 0 : index
    %c0_37 = arith.constant 0 : index
    %67 = vector.load %arg12[%c0_36, %c0_37] : memref<32x128xf32, #tpu.memory_space<vmem>>, vector<32x128xf32>
    %68 = arith.truncf %30 : vector<32x32xf32> to vector<32x32xbf16>
    %69 = arith.truncf %67 : vector<32x128xf32> to vector<32x128xbf16>
    %cst_38 = arith.constant dense<0.000000e+00> : vector<32x128xf32>
    %70 = tpu.matmul %68, %69, %cst_38 {dimension_numbers = #tpu.dot_dimension_numbers<[1], [0], [0], [1], [0, 0, 1, 1], [], []>} : vector<32x32xbf16>, vector<32x128xbf16>, vector<32x128xf32> -> vector<32x128xf32>
    %c0_39 = arith.constant 0 : index
    %c0_40 = arith.constant 0 : index
    %71 = vector.load %arg13[%c0_39, %c0_40] : memref<32x128xf32, #tpu.memory_space<vmem>>, vector<32x128xf32>
    %72 = arith.truncf %66 : vector<32x32xf32> to vector<32x32xbf16>
    %73 = arith.truncf %71 : vector<32x128xf32> to vector<32x128xbf16>
    %cst_41 = arith.constant dense<0.000000e+00> : vector<32x128xf32>
    %74 = tpu.matmul %72, %73, %cst_41 {dimension_numbers = #tpu.dot_dimension_numbers<[1], [0], [0], [1], [0, 0, 1, 1], [], []>} : vector<32x32xbf16>, vector<32x128xbf16>, vector<32x128xf32> -> vector<32x128xf32>
    %75 = arith.addf %70, %74 : vector<32x128xf32>
    %c0_42 = arith.constant 0 : index
    %c0_43 = arith.constant 0 : index
    %76 = vector.load %arg14[%c0_42, %c0_43] : memref<1x128xf32, #tpu.memory_space<vmem>>, vector<1x128xf32>
    %77 = vector.broadcast %76 : vector<1x128xf32> to vector<32x128xf32>
    %78 = arith.addf %75, %77 : vector<32x128xf32>
    %c0_44 = arith.constant 0 : index
    %c0_45 = arith.constant 0 : index
    %79 = vector.load %arg15[%c0_44, %c0_45] : memref<32x128xf32, #tpu.memory_space<vmem>>, vector<32x128xf32>
    tpu.vector_store %arg15[%c0_44, %c0_45], %78 {strides = array<i32>} : memref<32x128xf32, #tpu.memory_space<vmem>>, vector<32x128xf32>,
    return
  }
  func.func @transform_0(%arg0: i32) -> (i32, i32) {
    %c0_i32 = arith.constant 0 : i32
    %c0_i32_0 = arith.constant 0 : i32
    return %arg0, %c0_i32 : i32, i32
  }
  func.func @transform_1(%arg0: i32) -> (i32, i32) {
    %c0_i32 = arith.constant 0 : i32
    %c0_i32_0 = arith.constant 0 : i32
    %c0_i32_1 = arith.constant 0 : i32
    return %c0_i32, %c0_i32_0 : i32, i32
  }
  func.func @transform_2(%arg0: i32) -> (i32, i32) {
    %c0_i32 = arith.constant 0 : i32
    %c0_i32_0 = arith.constant 0 : i32
    %c0_i32_1 = arith.constant 0 : i32
    return %c0_i32, %c0_i32_0 : i32, i32
  }
  func.func @transform_3(%arg0: i32) -> (i32, i32) {
    %c0_i32 = arith.constant 0 : i32
    %c0_i32_0 = arith.constant 0 : i32
    %c0_i32_1 = arith.constant 0 : i32
    return %c0_i32, %c0_i32_0 : i32, i32
  }
  func.func @transform_4(%arg0: i32) -> (i32, i32) {
    %c0_i32 = arith.constant 0 : i32
    %c0_i32_0 = arith.constant 0 : i32
    %c0_i32_1 = arith.constant 0 : i32
    return %c0_i32, %c0_i32_0 : i32, i32
  }
  func.func @transform_5(%arg0: i32) -> (i32, i32) {
    %c0_i32 = arith.constant 0 : i32
    %c0_i32_0 = arith.constant 0 : i32
    %c0_i32_1 = arith.constant 0 : i32
    return %c0_i32, %c0_i32_0 : i32, i32
  }
  func.func @transform_6(%arg0: i32) -> (i32, i32) {
    %c0_i32 = arith.constant 0 : i32
    %c0_i32_0 = arith.constant 0 : i32
    %c0_i32_1 = arith.constant 0 : i32
    return %c0_i32, %c0_i32_0 : i32, i32
  }
  func.func @transform_7(%arg0: i32) -> (i32, i32) {
    %c0_i32 = arith.constant 0 : i32
    %c0_i32_0 = arith.constant 0 : i32
    %c0_i32_1 = arith.constant 0 : i32
    return %c0_i32, %c0_i32_0 : i32, i32
  }
  func.func @transform_8(%arg0: i32) -> (i32, i32) {
    %c0_i32 = arith.constant 0 : i32
    %c0_i32_0 = arith.constant 0 : i32
    %c0_i32_1 = arith.constant 0 : i32
    return %c0_i32, %c0_i32_0 : i32, i32
  }
  func.func @transform_9(%arg0: i32) -> (i32, i32) {
    %c0_i32 = arith.constant 0 : i32
    %c0_i32_0 = arith.constant 0 : i32
    %c0_i32_1 = arith.constant 0 : i32
    return %c0_i32, %c0_i32_0 : i32, i32
  }
  func.func @transform_10(%arg0: i32) -> (i32, i32) {
    %c0_i32 = arith.constant 0 : i32
    %c0_i32_0 = arith.constant 0 : i32
    %c0_i32_1 = arith.constant 0 : i32
    return %c0_i32, %c0_i32_0 : i32, i32
  }
  func.func @transform_11(%arg0: i32) -> (i32, i32) {
    %c0_i32 = arith.constant 0 : i32
    %c0_i32_0 = arith.constant 0 : i32
    %c0_i32_1 = arith.constant 0 : i32
    return %c0_i32, %c0_i32_0 : i32, i32
  }
  func.func @transform_12(%arg0: i32) -> (i32, i32) {
    %c0_i32 = arith.constant 0 : i32
    %c0_i32_0 = arith.constant 0 : i32
    %c0_i32_1 = arith.constant 0 : i32
    return %c0_i32, %c0_i32_0 : i32, i32
  }
  func.func @transform_13(%arg0: i32) -> (i32, i32) {
    %c0_i32 = arith.constant 0 : i32
    %c0_i32_0 = arith.constant 0 : i32
    %c0_i32_1 = arith.constant 0 : i32
    return %c0_i32, %c0_i32_0 : i32, i32
  }
  func.func @transform_14(%arg0: i32) -> (i32, i32) {
    %c0_i32 = arith.constant 0 : i32
    %c0_i32_0 = arith.constant 0 : i32
    return %arg0, %c0_i32 : i32, i32
  }
}

</mosaic_0001>

<bundles_post_ra>
// kernel: net_forward.10
= control target key start
LH: loop header
LB: loop body
LE: loop exit
PB: predicated region body
PF: predicated region fallthrough
CT: control target
= control target key end

     0   :  { %vm37_vm0 = vcmask 130048   ;;  %vm138_vm5 = vcmask 523264   ;;  %s379_s1 = inlined_call_operand.vmem [shape: f32[16,64], index: 1, kind: input, shape index: {}]   ;;  %s380_s0 = inlined_call_operand.vmem [shape: f32[32,16], index: 0, kind: input, shape index: {}]   ;;  %s381_s3 = inlined_call_operand.vmem [shape: f32[64,64], index: 3, kind: input, shape index: {}]   ;;  %s382_s2 = inlined_call_operand.vmem [shape: f32[1,64], index: 2, kind: input, shape index: {}]   ;;  %s383_s4 = inlined_call_operand.vmem [shape: f32[1,64], index: 4, kind: input, shape index: {}]   ;;  %s384_s5 = inlined_call_operand.vmem [shape: f32[32,64], index: 5, kind: output, shape index: {}]  }
   0x1   :  { %v25_v0 = vld [vmem:[%s379_s1] sm:$0xff]  ;;  %v26_v1 = vld [vmem:[%s379_s1 + $0x8] sm:$0xff]  ;;  %v23_v5 = vld [vmem:[%s380_s0 + $0x10] sm:$0xff] }
   0x2   :  { %v21_v2 = vld [vmem:[%s380_s0] sm:$0xff]  ;;  %v29_v3 = vpack.c.bf16 %v26_v1, %v25_v0  ;;  %v22_v4 = vld [vmem:[%s380_s0 + $0x8] sm:$0xff]  ;;  %v24_v6 = vld [vmem:[%s380_s0 + $0x18] sm:$0xff] }
   0x3   :  { %v27_v7 = vpack.c.bf16 %v22_v4, %v21_v2  ;;  %v28_v8 = vpack.c.bf16 %v24_v6, %v23_v5  ;;  %v117_v9 = vld [vmem:[%s381_s3] sm:$0xff]  ;;  %v118_v10 = vld [vmem:[%s381_s3 + $0x8] sm:$0xff]  ;;  %v119_v12 = vld [vmem:[%s381_s3 + $0x10] sm:$0xff] }
   0x4   :  { %249 = vmatprep.subr.bf16.mxu0 %v29_v3  ;;  %v127_v11 = vpack.c.bf16 %v118_v10, %v117_v9  ;;  %v120_v13 = vld [vmem:[%s381_s3 + $0x18] sm:$0xff]  ;;  %v121_v15 = vld [vmem:[%s381_s3 + $0x20] sm:$0xff]  ;;  %v122_v16 = vld [vmem:[%s381_s3 + $0x28] sm:$0xff] }
   0x5   :  { %250 = vmatpush3.bf16.msra.mxu0 %v29_v3  ;;  %251 = vmatprep.mubr.msk.bf16.mxu0 %vm37_vm0, %v27_v7  ;;  %v128_v14 = vpack.c.bf16 %v120_v13, %v119_v12  ;;  %v129_v17 = vpack.c.bf16 %v122_v16, %v121_v15  ;;  %v123_v18 = vld [vmem:[%s381_s3 + $0x30] sm:$0xff]  ;;  %v124_v19 = vld [vmem:[%s381_s3 + $0x38] sm:$0xff]  ;;  %v226_v21 = vld [vmem:[%s382_s2] ss:$0 sm:$0xff] }
   0x6   :  { %255 = vmatprep.subr.bf16.mxu1 %v127_v11  ;;  %v130_v20 = vpack.c.bf16 %v124_v19, %v123_v18  ;;  %v233_v52 = vld [vmem:[%s383_s4] ss:$0 sm:$0xff] }
   0x7   :  { %256 = vmatpush3.bf16.msra.mxu1 %v127_v11 }
   0x8   :  { %252 = vmatmul.mubr.msk.bf16.vlgmr.msra.gmra.mrb[0].mxu0 %vm37_vm0, %v28_v8  ;;  %257 = vmatprep.subr.bf16.mxu1 %v128_v14 }
   0xb   :  { %258 = vmatpush3.bf16.msra.mxu1 %v128_v14 }
   0xc   :  { %259 = vmatprep.subr.bf16.mxu1 %v129_v17 }
   0xf   :  { %260 = vmatpush3.bf16.msra.mxu1 %v129_v17 }
  0x10   :  { %261 = vmatprep.subr.bf16.mxu1 %v130_v20 }
  0x13   :  { %262 = vmatpush3.bf16.msra.mxu1 %v130_v20 }
  0xdb   :  { %v253_v22 = vpop.f32.mrb[0].mxu0 }
  0xdc   :  { %v87_v23 = vadd.f32 %v253_v22, %v226_v21  ;;  %v78_v24 = vpop.f32.mrb[1].mxu0 }
  0xdd   :  { %v79_v25 = vadd.f32 %v226_v21, %v78_v24  ;;  %v254_v26 = vpop.f32.mrb[2].mxu0 }
  0xde   :  { %v99_v27 = vmin.f32 %v87_v23, 0.0  ;;  %v90_v28 = vadd.f32 %v254_v26, %v226_v21  ;;  %v81_v29 = vpop.f32.mrb[3].mxu0  ;;  %vm95_vm1 = vcmp.gt.f32.partialorder %v87_v23, 0.0 }
  0xdf   :  { %v97_v30 = vmin.f32 %v79_v25, 0.0  ;;  %v82_v31 = vadd.f32 %v226_v21, %v81_v29  ;;  %vm93_vm3 = vcmp.gt.f32.partialorder %v79_v25, 0.0 }
  0xe0   :  { %v105_v32 = vmul.f32 1.442695, %v99_v27  ;;  %v100_v33 = vmin.f32 %v90_v28, 0.0  ;;  %vm96_vm2 = vcmp.gt.f32.partialorder %v90_v28, 0.0 }
  0xe1   :  { %v101_v34 = vmul.f32 1.442695, %v97_v30  ;;  %v98_v35 = vmin.f32 %v82_v31, 0.0  ;;  %vm94_vm4 = vcmp.gt.f32.partialorder %v82_v31, 0.0 }
  0xe2   :  { %267 = vpow2.f32 %v105_v32  ;;  %v107_v36 = vmul.f32 1.442695, %v100_v33 }
  0xe3   :  { %269 = vpow2.f32 %v101_v34  ;;  %v103_v37 = vmul.f32 1.442695, %v98_v35 }
  0xe4   :  { %271 = vpow2.f32 %v107_v36 }
  0xe5   :  { %273 = vpow2.f32 %v103_v37 }
  0xec   :  { %v268_v38 = vpop.eup %267 }
  0xed   :  { %v270_v39 = vpop.eup %269  ;;  %v231_v40 = vadd.f32 -1.0, %v268_v38 }
  0xee   :  { %v272_v41 = vpop.eup %271  ;;  %v229_v42 = vadd.f32 -1.0, %v270_v39 }
  0xef   :  { %v274_v43 = vpop.eup %273  ;;  %v232_v44 = vadd.f32 -1.0, %v272_v41  ;;  %v115_v46 = vsel %vm95_vm1, %v87_v23, %v231_v40 }
  0xf0   :  { %v230_v45 = vadd.f32 -1.0, %v274_v43  ;;  %v113_v49 = vsel %vm93_vm3, %v79_v25, %v229_v42 }
  0xf1   :  { %v116_v47 = vsel %vm96_vm2, %v90_v28, %v232_v44 }
  0xf2   :  { %v126_v48 = vpack.c.bf16 %v116_v47, %v115_v46  ;;  %v114_v50 = vsel %vm94_vm4, %v82_v31, %v230_v45 }
  0xf3   :  { %v125_v51 = vpack.c.bf16 %v114_v50, %v113_v49 }
  0xf5   :  { %263 = vmatprep.mubr.msk.bf16.mxu1 %vm138_vm5, %v125_v51 }
  0xf6   :  { %264 = vmatmul.mubr.msk.bf16.vlgmr.msra.gmra.mrb[0].mxu1 %vm138_vm5, %v126_v48 }
 0x1c9   :  { %v265_v53 = vpop.f32.mrb[0].mxu1 }
 0x1ca   :  { %v188_v54 = vadd.f32 %v265_v53, %v233_v52  ;;  %v179_v55 = vpop.f32.mrb[1].mxu1 }
 0x1cb   :  { %v180_v56 = vadd.f32 %v233_v52, %v179_v55  ;;  %v266_v57 = vpop.f32.mrb[2].mxu1 }
 0x1cc   :  { %v200_v58 = vmin.f32 %v188_v54, 0.0  ;;  %v191_v59 = vadd.f32 %v266_v57, %v233_v52  ;;  %v182_v60 = vpop.f32.mrb[3].mxu1  ;;  %vm196_vm6 = vcmp.gt.f32.partialorder %v188_v54, 0.0 }
 0x1cd   :  { %v198_v61 = vmin.f32 %v180_v56, 0.0  ;;  %v183_v62 = vadd.f32 %v233_v52, %v182_v60  ;;  %vm194_vm7 = vcmp.gt.f32.partialorder %v180_v56, 0.0 }
 0x1ce   :  { %v206_v63 = vmul.f32 1.442695, %v200_v58  ;;  %v201_v0 = vmin.f32 %v191_v59, 0.0  ;;  %vm197_vm8 = vcmp.gt.f32.partialorder %v191_v59, 0.0 }
 0x1cf   :  { %v202_v1 = vmul.f32 1.442695, %v198_v61  ;;  %v199_v2 = vmin.f32 %v183_v62, 0.0  ;;  %vm195_vm9 = vcmp.gt.f32.partialorder %v183_v62, 0.0 }
 0x1d0   :  { %275 = vpow2.f32 %v206_v63  ;;  %v208_v3 = vmul.f32 1.442695, %v201_v0 }
 0x1d1   :  { %277 = vpow2.f32 %v202_v1  ;;  %v204_v4 = vmul.f32 1.442695, %v199_v2 }
 0x1d2   :  { %279 = vpow2.f32 %v208_v3 }
 0x1d3   :  { %281 = vpow2.f32 %v204_v4 }
 0x1da   :  { %v276_v5 = vpop.eup %275 }
 0x1db   :  { %v278_v6 = vpop.eup %277  ;;  %v238_v7 = vadd.f32 -1.0, %v276_v5 }
 0x1dc   :  { %v280_v8 = vpop.eup %279  ;;  %v236_v9 = vadd.f32 -1.0, %v278_v6 }
 0x1dd   :  { %v282_v10 = vpop.eup %281  ;;  %v216_v11 = vsel %vm196_vm6, %v188_v54, %v238_v7  ;;  %v239_v12 = vadd.f32 -1.0, %v280_v8 }
 0x1de   :  { %220 = vst.msk [vmem:[%s384_s5 + $0x10] sm:$0xff] %vm138_vm5, %v216_v11  ;;  %v214_v13 = vsel %vm194_vm7, %v180_v56, %v236_v9  ;;  %v237_v14 = vadd.f32 -1.0, %v282_v10 }
 0x1df   :  { %218 = vst.msk [vmem:[%s384_s5] sm:$0xff] %vm138_vm5, %v214_v13  ;;  %v217_v15 = vsel %vm197_vm8, %v191_v59, %v239_v12 }
 0x1e0   :  { %221 = vst.msk [vmem:[%s384_s5 + $0x18] sm:$0xff] %vm138_vm5, %v217_v15  ;;  %v215_v16 = vsel %vm195_vm9, %v183_v62, %v237_v14 }
 0x1e1   :  { %219 = vst.msk [vmem:[%s384_s5 + $0x8] sm:$0xff] %vm138_vm5, %v215_v16 }

// kernel: net_forward.11
= control target key start
LH: loop header
LB: loop body
LE: loop exit
PB: predicated region body
PF: predicated region fallthrough
CT: control target
= control target key end

     0   :  { %vm30_vm0 = vcmask 523264   ;;  %s179_s1 = inlined_call_operand.vmem [shape: f32[64,128], index: 1, kind: input, shape index: {}]   ;;  %s180_s0 = inlined_call_operand.vmem [shape: f32[32,64], index: 0, kind: input, shape index: {}]   ;;  %s181_s2 = inlined_call_operand.vmem [shape: f32[32,128], index: 2, kind: output, shape index: {}]  }
   0x1   :  { %v16_v0 = vld [vmem:[%s179_s1] sm:$0xff]  ;;  %v17_v1 = vld [vmem:[%s179_s1 + $0x8] sm:$0xff]  ;;  %v18_v2 = vld [vmem:[%s179_s1 + $0x10] sm:$0xff] }
   0x2   :  { %v26_v3 = vpack.c.bf16 %v17_v1, %v16_v0  ;;  %v19_v4 = vld [vmem:[%s179_s1 + $0x18] sm:$0xff]  ;;  %v20_v6 = vld [vmem:[%s179_s1 + $0x20] sm:$0xff]  ;;  %v21_v7 = vld [vmem:[%s179_s1 + $0x28] sm:$0xff] }
   0x3   :  { %v27_v5 = vpack.c.bf16 %v19_v4, %v18_v2  ;;  %v12_v8 = vld [vmem:[%s180_s0] sm:$0xff]  ;;  %v13_v9 = vld [vmem:[%s180_s0 + $0x8] sm:$0xff]  ;;  %v28_v11 = vpack.c.bf16 %v21_v7, %v20_v6  ;;  %v22_v12 = vld [vmem:[%s179_s1 + $0x30] sm:$0xff] }
   0x4   :  { %102 = vmatprep.subr.bf16.mxu0 %v26_v3  ;;  %v24_v10 = vpack.c.bf16 %v13_v9, %v12_v8  ;;  %v23_v13 = vld [vmem:[%s179_s1 + $0x38] sm:$0xff]  ;;  %v14_v15 = vld [vmem:[%s180_s0 + $0x10] sm:$0xff] }
   0x5   :  { %103 = vmatpush3.bf16.msra.mxu0 %v26_v3  ;;  %v29_v14 = vpack.c.bf16 %v23_v13, %v22_v12  ;;  %v15_v16 = vld [vmem:[%s180_s0 + $0x18] sm:$0xff] }
   0x6   :  { %104 = vmatprep.subr.bf16.mxu0 %v27_v5  ;;  %110 = vmatprep.mubr.msk.bf16.mxu0 %vm30_vm0, %v24_v10  ;;  %v25_v17 = vpack.c.bf16 %v15_v16, %v14_v15 }
   0x9   :  { %105 = vmatpush3.bf16.msra.mxu0 %v27_v5 }
   0xa   :  { %106 = vmatprep.subr.bf16.mxu0 %v28_v11 }
   0xd   :  { %107 = vmatpush3.bf16.msra.mxu0 %v28_v11 }
   0xe   :  { %108 = vmatprep.subr.bf16.mxu0 %v29_v14 }
  0x11   :  { %109 = vmatpush3.bf16.msra.mxu0 %v29_v14 }
  0x14   :  { %111 = vmatmul.mubr.msk.bf16.vlgmr.msra.gmra.mrb[0].mxu0 %vm30_vm0, %v25_v17 }
  0xe7   :  { %v112_v18 = vpop.f32.mrb[0].mxu0 }
  0xe8   :  { %88 = vst [vmem:[%s181_s2 + $0x10] sm:$0xff] %v112_v18  ;;  %v71_v19 = vpop.f32.mrb[1].mxu0 }
  0xe9   :  { %86 = vst [vmem:[%s181_s2] sm:$0xff] %v71_v19  ;;  %v113_v20 = vpop.f32.mrb[2].mxu0 }
  0xea   :  { %89 = vst [vmem:[%s181_s2 + $0x18] sm:$0xff] %v113_v20  ;;  %v74_v21 = vpop.f32.mrb[3].mxu0 }
  0xeb   :  { %87 = vst [vmem:[%s181_s2 + $0x8] sm:$0xff] %v74_v21 }

// kernel: net_forward.12
= control target key start
LH: loop header
LB: loop body
LE: loop exit
PB: predicated region body
PF: predicated region fallthrough
CT: control target
= control target key end

     0   :  { %v220_v0 = vlaneseq  ;;  %vm33_vm0 = vcmask 7168   ;;  %v502_v4 = vmov 0.0   ;;  %v503_v32 = vmov 1.0|1.0   ;;  %s852_s0 = inlined_call_operand.vmem [shape: s32[1,128], index: 0, kind: input, shape index: {}]   ;;  %s853_s1 = inlined_call_operand.vmem [shape: f32[128,64], index: 1, kind: input, shape index: {}]   ;;  %s854_s2 = inlined_call_operand.vmem [shape: f32[1,64], index: 2, kind: input, shape index: {}]   ;;  %s855_s3 = inlined_call_operand.vmem [shape: f32[1,64], index: 3, kind: input, shape index: {}]   ;;  %s856_s4 = inlined_call_operand.vmem [shape: f32[1,64], index: 4, kind: input, shape index: {}]   ;;  %s857_s5 = inlined_call_operand.vmem [shape: f32[32,64], index: 5, kind: input, shape index: {}, may-alias: {5,6}]   ;;  %s858_s6 = inlined_call_operand.vmem [shape: f32[32,64], index: 6, kind: output, shape index: {}, may-alias: {5,6}]  }
   0x1   :  { %v543_v1 = vld [vmem:[%s852_s0] ss:$0 sm:$0xff]  ;;  %v39_v3 = vld [vmem:[%s853_s1 + $0x8] sm:$0xff]  ;;  %34 = vst.msk [vmem:[#allocation3] sm:$0xff] %vm33_vm0, %v502_v4  ;;  %35 = vst.msk [vmem:[#allocation3 + $0x8] sm:$0xff] %vm33_vm0, %v502_v4 }
   0x2   :  { %v38_v2 = vld [vmem:[%s853_s1] sm:$0xff]  ;;  %36 = vst.msk [vmem:[#allocation3 + $0x10] sm:$0xff] %vm33_vm0, %v502_v4  ;;  %37 = vst.msk [vmem:[#allocation3 + $0x18] sm:$0xff] %vm33_vm0, %v502_v4  ;;  %v221_v5 = vshrl.u32 %v220_v0, 7  ;;  %v40_v7 = vld [vmem:[%s853_s1 + $0x10] sm:$0xff] }
   0x3   :  { %v562_v6 = vld [vmem:[%s854_s2] ss:$0 sm:$0xff]  ;;  %v41_v16 = vld [vmem:[%s853_s1 + $0x18] sm:$0xff]  ;;  %v43_v19 = vld [vmem:[%s853_s1 + $0x28] sm:$0xff] }
   0x4   :  { %v568_v8 = vadd.f32 %v562_v6, %v38_v2  ;;  %v571_v9 = vadd.f32 %v562_v6, %v39_v3  ;;  %v574_v10 = vadd.f32 %v562_v6, %v40_v7  ;;  %vm235_vm1 = vcmp.eq.s32.totalorder %v221_v5, %v543_v1  ;;  %v42_v18 = vld [vmem:[%s853_s1 + $0x20] sm:$0xff]  ;;  %v44_v20 = vld [vmem:[%s853_s1 + $0x30] sm:$0xff]  ;;  %v45_v30 = vld [vmem:[%s853_s1 + $0x38] sm:$0xff] }
   0x5   :  { %v222_v11 = vadd.s32 8, %v221_v5  ;;  %v577_v12 = vadd.s32 16, %v221_v5  ;;  %v579_v13 = vadd.s32 24, %v221_v5  ;;  %v419_v14 = vsel %vm235_vm1, 1.0, %v502_v4  ;;  %v46_v35 = vld [vmem:[%s853_s1 + $0x40] sm:$0xff]  ;;  %v47_v38 = vld [vmem:[%s853_s1 + $0x48] sm:$0xff] }
   0x6   :  { %v93_v15 = vmin.f32 %v568_v8, 0.0  ;;  %323 = vadd.xlane.f32.xlu0 %v419_v14  ;;  %v94_v17 = vmin.f32 %v571_v9, 0.0  ;;  %v615_v26 = vadd.f32 %v562_v6, %v41_v16  ;;  %v95_v27 = vmin.f32 %v574_v10, 0.0  ;;  %v48_v47 = vld [vmem:[%s853_s1 + $0x50] sm:$0xff]  ;;  %v49_v48 = vld [vmem:[%s853_s1 + $0x58] sm:$0xff]  ;;  %v50_v51 = vld [vmem:[%s853_s1 + $0x60] sm:$0xff] }
   0x7   :  { %vm236_vm2 = vcmp.eq.s32.totalorder %v222_v11, %v543_v1  ;;  %vm237_vm3 = vcmp.eq.s32.totalorder %v577_v12, %v543_v1  ;;  %vm238_vm4 = vcmp.eq.s32.totalorder %v579_v13, %v543_v1  ;;  %v623_v28 = vadd.f32 %v562_v6, %v42_v18  ;;  %v51_v52 = vld [vmem:[%s853_s1 + $0x68] sm:$0xff]  ;;  %v688_v62 = vld [vmem:[%s855_s3] ss:$0 sm:$0xff] }
   0x8   :  { %v420_v21 = vsel %vm236_vm2, 1.0, %v502_v4  ;;  %v421_v22 = vsel %vm237_vm3, 1.0, %v502_v4  ;;  %v109_v23 = vmul.f32 1.442695, %v93_v15  ;;  %v422_v24 = vsel %vm238_vm4, 1.0, %v502_v4  ;;  %vm423_vm5 = vmpackc.low %vm236_vm2, %vm235_vm1 }
   0x9   :  { %327 = vadd.xlane.f32.xlu1 %v421_v22  ;;  %v111_v25 = vmul.f32 1.442695, %v94_v17  ;;  %v626_v29 = vadd.f32 %v562_v6, %v43_v19  ;;  %v632_v31 = vadd.f32 %v562_v6, %v44_v20  ;;  %453 = vmatprep.mubr.msk.bf16.mxu0 %vm423_vm5, %v503_v32  ;;  %v96_v33 = vmin.f32 %v615_v26, 0.0  ;;  %v696_v3 = vld [vmem:[%s856_s4] ss:$0 sm:$0xff]  ;;  %v52_v19 = vld [vmem:[%s853_s1 + $0x70] sm:$0xff] }
   0xa   :  { %462 = vpow2.f32 %v109_v23  ;;  %325 = vadd.xlane.f32.xlu0 %v420_v21  ;;  %v113_v34 = vmul.f32 1.442695, %v95_v27  ;;  %v97_v36 = vmin.f32 %v623_v28, 0.0  ;;  %vm77_vm6 = vcmp.gt.f32.partialorder %v568_v8, 0.0  ;;  %v53_v27 = vld [vmem:[%s853_s1 + $0x78] sm:$0xff] }
   0xb   :  { %464 = vpow2.f32 %v111_v25  ;;  %v98_v37 = vmin.f32 %v626_v29, 0.0  ;;  %v115_v39 = vmul.f32 1.442695, %v96_v33  ;;  %v646_v40 = vadd.f32 %v562_v6, %v45_v30 }
   0xc   :  { %466 = vpow2.f32 %v113_v34  ;;  %v117_v41 = vmul.f32 1.442695, %v97_v36  ;;  %v99_v43 = vmin.f32 %v632_v31, 0.0  ;;  %v650_v44 = vadd.f32 %v562_v6, %v46_v35 }
   0xd   :  { %329 = vadd.xlane.f32.xlu1 %v422_v24  ;;  %v119_v42 = vmul.f32 1.442695, %v98_v37  ;;  %vm78_vm7 = vcmp.gt.f32.partialorder %v571_v9, 0.0  ;;  %468 = vpow2.f32 %v115_v39  ;;  %v100_v45 = vmin.f32 %v646_v40, 0.0 }
   0xe   :  { %v655_v46 = vadd.f32 %v562_v6, %v47_v38  ;;  %vm79_vm8 = vcmp.gt.f32.partialorder %v574_v10, 0.0  ;;  %470 = vpow2.f32 %v117_v41  ;;  %v121_v49 = vmul.f32 1.442695, %v99_v43 }
   0xf   :  { %v101_v50 = vmin.f32 %v650_v44, 0.0  ;;  %vm80_vm9 = vcmp.gt.f32.partialorder %v615_v26, 0.0  ;;  %472 = vpow2.f32 %v119_v42  ;;  %v123_v53 = vmul.f32 1.442695, %v100_v45 }
  0x10   :  { %v102_v54 = vmin.f32 %v655_v46, 0.0  ;;  %474 = vpow2.f32 %v121_v49  ;;  %v674_v56 = vadd.f32 %v562_v6, %v48_v47  ;;  %v677_v57 = vadd.f32 %v562_v6, %v49_v48 }
  0x11   :  { %v125_v55 = vmul.f32 1.442695, %v101_v50  ;;  %476 = vpow2.f32 %v123_v53  ;;  %v680_v59 = vadd.f32 %v562_v6, %v50_v51  ;;  %v683_v60 = vadd.f32 %v562_v6, %v51_v52 }
  0x12   :  { %v127_v58 = vmul.f32 1.442695, %v102_v54  ;;  %vm81_vm10 = vcmp.gt.f32.partialorder %v623_v28, 0.0  ;;  %vm82_vm11 = vcmp.gt.f32.partialorder %v626_v29, 0.0  ;;  %v103_v63 = vmin.f32 %v674_v56, 0.0 }
  0x13   :  { %478 = vpow2.f32 %v125_v55  ;;  %vm83_vm12 = vcmp.gt.f32.partialorder %v632_v31, 0.0  ;;  %v104_v5 = vmin.f32 %v677_v57, 0.0  ;;  %vm84_vm13 = vcmp.gt.f32.partialorder %v646_v40, 0.0 }
  0x14   :  { %v463_v61 = vpop.eup %462  ;;  %480 = vpow2.f32 %v127_v58  ;;  %v129_v11 = vmul.f32 1.442695, %v103_v63  ;;  %v105_v14 = vmin.f32 %v680_v59, 0.0  ;;  %vm85_vm14 = vcmp.gt.f32.partialorder %v650_v44, 0.0 }
  0x15   :  { %v465_v0 = vpop.eup %464  ;;  %v400_v2 = vadd.f32 -1.0, %v463_v61  ;;  %vm86_vm15 = vcmp.gt.f32.partialorder %v655_v46, 0.0  ;;  %v131_v17 = vmul.f32 1.442695, %v104_v5  ;;  %v106_v18 = vmin.f32 %v683_v60, 0.0 }
  0x16   :  { %v401_v7 = vadd.f32 -1.0, %v465_v0  ;;  %v467_v15 = vpop.eup %466  ;;  %482 = vpow2.f32 %v129_v11  ;;  %v133_v24 = vmul.f32 1.442695, %v105_v14  ;;  %v724_v35 = vadd.f32 %v562_v6, %v52_v19 }
  0x17   :  { %v157_v16 = vsel %vm77_vm6, %v568_v8, %v400_v2  ;;  %v402_v22 = vadd.f32 -1.0, %v467_v15  ;;  %v469_v8 = vpop.eup %468  ;;  %484 = vpow2.f32 %v131_v17  ;;  %v135_v25 = vmul.f32 1.442695, %v106_v18 }
  0x18   :  { %v158_v20 = vsel %vm78_vm7, %v571_v9, %v401_v7  ;;  %v180_v21 = vmul.f32 %v688_v62, %v157_v16  ;;  %v471_v30 = vpop.eup %470  ;;  %v403_v34 = vadd.f32 -1.0, %v469_v8  ;;  %vm87_vm1 = vcmp.gt.f32.partialorder %v674_v56, 0.0 }
  0x19   :  { %v181_v23 = vmul.f32 %v688_v62, %v158_v20  ;;  %v159_v9 = vsel %vm79_vm8, %v574_v10, %v402_v22  ;;  %v473_v36 = vpop.eup %472  ;;  %v404_v39 = vadd.f32 -1.0, %v471_v30  ;;  %vm88_vm2 = vcmp.gt.f32.partialorder %v677_v57, 0.0 }
  0x1a   :  { %v203_v33 = vadd.f32 %v696_v3, %v180_v21  ;;  %v182_v38 = vmul.f32 %v688_v62, %v159_v9  ;;  %486 = vpow2.f32 %v133_v24  ;;  %v475_v41 = vpop.eup %474  ;;  %v160_v42 = vsel %vm80_vm9, %v615_v26, %v403_v34 }
  0x1b   :  { %v204_v37 = vadd.f32 %v696_v3, %v181_v23  ;;  %v405_v10 = vadd.f32 -1.0, %v473_v36  ;;  %488 = vpow2.f32 %v135_v25  ;;  %v734_v43 = vadd.f32 %v562_v6, %v53_v27  ;;  %v477_v45 = vpop.eup %476 }
  0x1c   :  { %v183_v48 = vmul.f32 %v688_v62, %v160_v42  ;;  %v205_v49 = vadd.f32 %v696_v3, %v182_v38  ;;  %v161_v50 = vsel %vm81_vm10, %v623_v28, %v404_v39  ;;  %vm89_vm5 = vcmp.gt.f32.partialorder %v680_v59, 0.0  ;;  %vm425_vm10 = vmpackc.low %vm238_vm4, %vm237_vm3 }
  0x1d   :  { %v253_v47 = vpack.c.bf16 %v204_v37, %v203_v33  ;;  %v479_v51 = vpop.eup %478  ;;  %v162_v26 = vsel %vm82_vm11, %v626_v29, %v405_v10  ;;  %v184_v6 = vmul.f32 %v688_v62, %v161_v50  ;;  %v406_v52 = vadd.f32 -1.0, %v475_v41 }
  0x1e   :  { %v407_v53 = vadd.f32 -1.0, %v477_v45  ;;  %v481_v54 = vpop.eup %480  ;;  %v206_v55 = vadd.f32 %v696_v3, %v183_v48  ;;  %v185_v58 = vmul.f32 %v688_v62, %v162_v26  ;;  %v408_v61 = vadd.f32 -1.0, %v479_v51 }
  0x1f   :  { %437 = vmatprep.subr.bf16.mxu0 %v253_v47  ;;  %vm90_vm6 = vcmp.gt.f32.partialorder %v683_v60, 0.0  ;;  %v207_v28 = vadd.f32 %v696_v3, %v184_v6  ;;  %v163_v29 = vsel %vm83_vm12, %v632_v31, %v406_v52  ;;  %v409_v0 = vadd.f32 -1.0, %v481_v54 }
  0x20   :  { %438 = vmatpush3.bf16.msra.mxu0 %v253_v47  ;;  %v164_v63 = vsel %vm84_vm13, %v646_v40, %v407_v53  ;;  %v254_v2 = vpack.c.bf16 %v206_v55, %v205_v49  ;;  %v208_v5 = vadd.f32 %v696_v3, %v185_v58  ;;  %v186_v7 = vmul.f32 %v688_v62, %v163_v29  ;;  %v483_v14 = vpop.eup %482 }
  0x21   :  { %v187_v11 = vmul.f32 %v688_v62, %v164_v63  ;;  %v165_v15 = vsel %vm85_vm14, %v650_v44, %v408_v61  ;;  %v166_v31 = vsel %vm86_vm15, %v655_v46, %v409_v0  ;;  %v107_v16 = vmin.f32 %v724_v35, 0.0  ;;  %v485_v17 = vpop.eup %484  ;;  %v320_v63 = vld [vmem:[#allocation3 + $0x8] sm:$0xff] }
  0x22   :  { %v108_v40 = vmin.f32 %v734_v43, 0.0  ;;  %439 = vmatprep.subr.bf16.mxu0 %v254_v2  ;;  %v255_v18 = vpack.c.bf16 %v208_v5, %v207_v28  ;;  %v209_v19 = vadd.f32 %v696_v3, %v186_v7  ;;  %v188_v21 = vmul.f32 %v688_v62, %v165_v15  ;;  %v322_v5 = vld [vmem:[#allocation3 + $0x18] sm:$0xff] }
  0x23   :  { %v210_v20 = vadd.f32 %v696_v3, %v187_v11  ;;  %v189_v44 = vmul.f32 %v688_v62, %v166_v31  ;;  %v410_v22 = vadd.f32 -1.0, %v483_v14  ;;  %v411_v8 = vadd.f32 -1.0, %v485_v17 }
  0x24   :  { %440 = vmatpush3.bf16.msra.mxu0 %v254_v2  ;;  %v137_v23 = vmul.f32 1.442695, %v107_v16  ;;  %v487_v46 = vpop.eup %486  ;;  %v211_v25 = vadd.f32 %v696_v3, %v188_v21  ;;  %v139_v27 = vmul.f32 1.442695, %v108_v40  ;;  %v504_v37 = vmov 0  }
  0x25   :  { %441 = vmatprep.subr.bf16.mxu0 %v255_v18  ;;  %v256_v24 = vpack.c.bf16 %v210_v20, %v209_v19  ;;  %v489_v30 = vpop.eup %488  ;;  %v212_v33 = vadd.f32 %v696_v3, %v189_v44  ;;  %v167_v34 = vsel %vm87_vm1, %v674_v56, %v410_v22  ;;  %v168_v9 = vsel %vm88_vm2, %v677_v57, %v411_v8 }
  0x26   :  { %v412_v36 = vadd.f32 -1.0, %v487_v46  ;;  %460 = vset.pattern.permute.xlu0 %v504_v37  ;;  %461 = vset.pattern.permute.xlu1 %v504_v37  ;;  %v190_v38 = vmul.f32 %v688_v62, %v167_v34  ;;  %v191_v39 = vmul.f32 %v688_v62, %v168_v9  ;;  %v413_v41 = vadd.f32 -1.0, %v489_v30 }
  0x27   :  { %490 = vpow2.f32 %v137_v23  ;;  %v257_v42 = vpack.c.bf16 %v212_v33, %v211_v25  ;;  %vm28_vm7 = vcmask 523264   ;;  %vm91_vm8 = vcmp.gt.f32.partialorder %v724_v35, 0.0 }
  0x28   :  { %442 = vmatpush3.bf16.msra.mxu0 %v255_v18  ;;  %v169_v56 = vsel %vm89_vm5, %v680_v59, %v412_v36  ;;  %492 = vpow2.f32 %v139_v27  ;;  %v213_v57 = vadd.f32 %v696_v3, %v190_v38  ;;  %v214_v10 = vadd.f32 %v696_v3, %v191_v39  ;;  %31 = vst.msk [vmem:[#allocation2 + $0x10] sm:$0xff] %vm28_vm7, %v502_v4  ;;  %v383_v36 = vld [vmem:[%s857_s5] sm:$0xff] }
  0x29   :  { %443 = vmatprep.subr.bf16.mxu0 %v256_v24  ;;  %v170_v45 = vsel %vm90_vm6, %v683_v60, %v413_v41  ;;  %v192_v47 = vmul.f32 %v688_v62, %v169_v56  ;;  %29 = vst.msk [vmem:[#allocation2] sm:$0xff] %vm28_vm7, %v502_v4  ;;  %30 = vst.msk [vmem:[#allocation2 + $0x8] sm:$0xff] %vm28_vm7, %v502_v4  ;;  %vm92_vm9 = vcmp.gt.f32.partialorder %v734_v43, 0.0  ;;  %v384_v56 = vld [vmem:[%s857_s5 + $0x8] sm:$0xff] }
  0x2a   :  { %v193_v48 = vmul.f32 %v688_v62, %v170_v45  ;;  %v258_v49 = vpack.c.bf16 %v214_v10, %v213_v57  ;;  %32 = vst.msk [vmem:[#allocation2 + $0x18] sm:$0xff] %vm28_vm7, %v502_v4 }
  0x2b   :  { %v215_v50 = vadd.f32 %v696_v3, %v192_v47 }
  0x2c   :  { %444 = vmatpush3.bf16.msra.mxu0 %v256_v24  ;;  %v216_v59 = vadd.f32 %v696_v3, %v193_v48 }
  0x2d   :  { %445 = vmatprep.subr.bf16.mxu0 %v257_v42 }
  0x2e   :  { %v259_v51 = vpack.c.bf16 %v216_v59, %v215_v50 }
  0x2f   :  { %v251_v17 = vld [vmem:[#allocation2 + $0x10] sm:$0xff] }
  0x30   :  { %446 = vmatpush3.bf16.msra.mxu0 %v257_v42  ;;  %v249_v18 = vld [vmem:[#allocation2] sm:$0xff]  ;;  %v250_v22 = vld [vmem:[#allocation2 + $0x8] sm:$0xff] }
  0x31   :  { %v491_v60 = vpop.eup %490  ;;  %447 = vmatprep.subr.bf16.mxu0 %v258_v49  ;;  %v252_v20 = vld [vmem:[#allocation2 + $0x18] sm:$0xff] }
  0x32   :  { %v493_v26 = vpop.eup %492  ;;  %v414_v6 = vadd.f32 -1.0, %v491_v60 }
  0x33   :  { %v415_v52 = vadd.f32 -1.0, %v493_v26 }
  0x34   :  { %448 = vmatpush3.bf16.msra.mxu0 %v258_v49  ;;  %v171_v53 = vsel %vm91_vm8, %v724_v35, %v414_v6  ;;  %v319_v35 = vld [vmem:[#allocation3] sm:$0xff] }
  0x35   :  { %449 = vmatprep.subr.bf16.mxu0 %v259_v51  ;;  %v172_v54 = vsel %vm92_vm9, %v734_v43, %v415_v52  ;;  %v194_v55 = vmul.f32 %v688_v62, %v171_v53 }
  0x36   :  { %v195_v4 = vmul.f32 %v688_v62, %v172_v54  ;;  %v321_v62 = vld [vmem:[#allocation3 + $0x10] sm:$0xff] }
  0x37   :  { %v217_v58 = vadd.f32 %v696_v3, %v194_v55 }
  0x38   :  { %450 = vmatpush3.bf16.msra.mxu0 %v259_v51  ;;  %v218_v61 = vadd.f32 %v696_v3, %v195_v4 }
  0x3a   :  { %v260_v28 = vpack.c.bf16 %v218_v61, %v217_v58 }
  0x3c   :  { %451 = vmatprep.subr.bf16.mxu0 %v260_v28 }
  0x3d   :  { %452 = vmatpush3.bf16.msra.mxu0 %v260_v28 }
  0x40   :  { %454 = vmatmul.mubr.msk.bf16.vlgmr.msra.gmra.mrb[0].mxu0 %vm425_vm10, %v503_v32 }
  0x93   :  { %v324_v43 = vpop.xlane.xlu0 %323 }
  0x94   :  { %v331_v29 = vadd.f32 %v324_v43, %v319_v35 }
  0x96   :  { %v328_v0 = vpop.xlane.xlu1 %327  ;;  %336 = vst.msk [vmem:[#allocation3] sm:$0xff] %vm33_vm0, %v331_v29 }
  0x97   :  { %v333_v3 = vadd.f32 %v328_v0, %v321_v62  ;;  %v326_v2 = vpop.xlane.xlu0 %325 }
  0x98   :  { %v332_v7 = vadd.f32 %v326_v2, %v320_v63 }
  0x99   :  { %338 = vst.msk [vmem:[#allocation3 + $0x10] sm:$0xff] %vm33_vm0, %v333_v3 }
  0x9a   :  { %v330_v12 = vpop.xlane.xlu1 %329  ;;  %337 = vst.msk [vmem:[#allocation3 + $0x8] sm:$0xff] %vm33_vm0, %v332_v7 }
  0x9b   :  { %v334_v1 = vadd.f32 %v330_v12, %v322_v5 }
  0x9d   :  { %339 = vst.msk [vmem:[#allocation3 + $0x18] sm:$0xff] %vm33_vm0, %v334_v1  ;;  %v343_v13 = vld [vmem:[#allocation3] sm:$0xff] }
  0x9e   :  { %v347_v32 = vmax.f32 %v343_v13, 1.0 }
  0xa0   :  { %357 = vperm.xlu0 %460, %v347_v32   ;;  %v345_v14 = vld [vmem:[#allocation3 + $0x10] sm:$0xff] }
  0xa1   :  { %v344_v11 = vld [vmem:[#allocation3 + $0x8] sm:$0xff]  ;;  %v349_v31 = vmax.f32 %v345_v14, 1.0 }
  0xa2   :  { %v348_v15 = vmax.f32 %v344_v11, 1.0 }
  0xa4   :  { %362 = vperm.xlu1 %461, %v348_v15   ;;  %v346_v16 = vld [vmem:[#allocation3 + $0x18] sm:$0xff] }
  0xa5   :  { %v350_v40 = vmax.f32 %v346_v16, 1.0 }
  0xa8   :  { %367 = vperm.xlu1 %461, %v349_v31  }
  0xac   :  { %372 = vperm.xlu1 %461, %v350_v40  }
 0x113   :  { %v455_v19 = vpop.f32.mrb[0].mxu0 }
 0x114   :  { %v312_v21 = vadd.f32 %v455_v19, %v251_v17  ;;  %v295_v44 = vpop.f32.mrb[1].mxu0 }
 0x115   :  { %v310_v8 = vadd.f32 %v295_v44, %v249_v18  ;;  %v456_v23 = vpop.f32.mrb[2].mxu0 }
 0x116   :  { %317 = vst.msk [vmem:[#allocation2 + $0x10] sm:$0xff] %vm28_vm7, %v312_v21  ;;  %v313_v46 = vadd.f32 %v456_v23, %v252_v20  ;;  %v298_v24 = vpop.f32.mrb[3].mxu0 }
 0x117   :  { %315 = vst.msk [vmem:[#allocation2] sm:$0xff] %vm28_vm7, %v310_v8  ;;  %v311_v25 = vadd.f32 %v298_v24, %v250_v22 }
 0x118   :  { %318 = vst.msk [vmem:[#allocation2 + $0x18] sm:$0xff] %vm28_vm7, %v313_v46 }
 0x119   :  { %316 = vst.msk [vmem:[#allocation2 + $0x8] sm:$0xff] %vm28_vm7, %v311_v25 }
 0x11d   :  { %v353_v10 = vld [vmem:[#allocation2 + $0x10] sm:$0xff] }
 0x11e   :  { %v351_v34 = vld [vmem:[#allocation2] sm:$0xff] }
 0x11f   :  { %v358_v27 = vpop.permute.xlu0 %357  ;;  %v354_v60 = vld [vmem:[#allocation2 + $0x18] sm:$0xff] }
 0x120   :  { %494 = vrcp.f32 %v358_v27  ;;  %v352_v39 = vld [vmem:[#allocation2 + $0x8] sm:$0xff] }
 0x123   :  { %v363_v30 = vpop.permute.xlu1 %362 }
 0x124   :  { %496 = vrcp.f32 %v363_v30 }
 0x127   :  { %v368_v33 = vpop.permute.xlu1 %367 }
 0x128   :  { %498 = vrcp.f32 %v368_v33 }
 0x12a   :  { %v495_v9 = vpop.eup %494 }
 0x12b   :  { %v376_v37 = vmul.f32 %v495_v9, %v351_v34  ;;  %v373_v38 = vpop.permute.xlu1 %372 }
 0x12c   :  { %500 = vrcp.f32 %v373_v38 }
 0x12d   :  { %v387_v41 = vadd.f32 %v383_v36, %v376_v37 }
 0x12e   :  { %v497_v42 = vpop.eup %496 }
 0x12f   :  { %v378_v57 = vmul.f32 %v497_v42, %v352_v39  ;;  %391 = vst.msk [vmem:[%s858_s6] sm:$0xff] %vm28_vm7, %v387_v41 }
 0x131   :  { %v388_v45 = vadd.f32 %v384_v56, %v378_v57 }
 0x132   :  { %v499_v47 = vpop.eup %498 }
 0x133   :  { %v380_v49 = vmul.f32 %v499_v47, %v353_v10 }
 0x136   :  { %v385_v48 = vld [vmem:[%s857_s5 + $0x10] sm:$0xff]  ;;  %v501_v59 = vpop.eup %500 }
 0x137   :  { %392 = vst.msk [vmem:[%s858_s6 + $0x8] sm:$0xff] %vm28_vm7, %v388_v45  ;;  %v389_v50 = vadd.f32 %v385_v48, %v380_v49  ;;  %v382_v26 = vmul.f32 %v501_v59, %v354_v60 }
 0x13e   :  { %v386_v51 = vld [vmem:[%s857_s5 + $0x18] sm:$0xff] }
 0x13f   :  { %393 = vst.msk [vmem:[%s858_s6 + $0x10] sm:$0xff] %vm28_vm7, %v389_v50  ;;  %v390_v6 = vadd.f32 %v386_v51, %v382_v26 }
 0x141   :  { %394 = vst.msk [vmem:[%s858_s6 + $0x18] sm:$0xff] %vm28_vm7, %v390_v6 }

// kernel: net_forward.19
= control target key start
LH: loop header
LB: loop body
LE: loop exit
PB: predicated region body
PF: predicated region fallthrough
CT: control target
= control target key end

     0   :  { %vm73_vm0 = vcmask 523264   ;;  %vm483_vm6 = vcmask 261120   ;;  %s1046_s1 = inlined_call_operand.vmem [shape: f32[64,64], index: 1, kind: input, shape index: {}]   ;;  %s1047_s0 = inlined_call_operand.vmem [shape: f32[32,64], index: 0, kind: input, shape index: {}]   ;;  %s1048_s3 = inlined_call_operand.vmem [shape: f32[64,32], index: 3, kind: input, shape index: {}]   ;;  %s1049_s5 = inlined_call_operand.vmem [shape: f32[64,64], index: 5, kind: input, shape index: {}]   ;;  %s1050_s2 = inlined_call_operand.vmem [shape: f32[1,64], index: 2, kind: input, shape index: {}]   ;;  %s1051_s9 = inlined_call_operand.vmem [shape: f32[64,32], index: 9, kind: input, shape index: {}]   ;;  %s1052_s11 = inlined_call_operand.vmem [shape: f32[32,128], index: 11, kind: input, shape index: {}]   ;;  %s1053_s4 = inlined_call_operand.vmem [shape: f32[1,32], index: 4, kind: input, shape index: {}]   ;;  %s1054_s6 = inlined_call_operand.vmem [shape: f32[1,64], index: 6, kind: input, shape index: {}]   ;;  %s1055_s7 = inlined_call_operand.vmem [shape: f32[1,64], index: 7, kind: input, shape index: {}]   ;;  %s1056_s8 = inlined_call_operand.vmem [shape: f32[1,64], index: 8, kind: input, shape index: {}]   ;;  %s1057_s12 = inlined_call_operand.vmem [shape: f32[32,128], index: 12, kind: input, shape index: {}]   ;;  %s1058_s10 = inlined_call_operand.vmem [shape: f32[1,32], index: 10, kind: input, shape index: {}]   ;;  %s1059_s13 = inlined_call_operand.vmem [shape: f32[1,128], index: 13, kind: input, shape index: {}]   ;;  %s1060_s14 = inlined_call_operand.vmem [shape: f32[32,128], index: 14, kind: output, shape index: {}]  }
   0x1   :  { %v52_v0 = vld [vmem:[%s1046_s1] sm:$0xff]  ;;  %v53_v1 = vld [vmem:[%s1046_s1 + $0x8] sm:$0xff]  ;;  %v54_v2 = vld [vmem:[%s1046_s1 + $0x10] sm:$0xff] }
   0x2   :  { %v62_v3 = vpack.c.bf16 %v53_v1, %v52_v0  ;;  %v55_v4 = vld [vmem:[%s1046_s1 + $0x18] sm:$0xff]  ;;  %v56_v6 = vld [vmem:[%s1046_s1 + $0x20] sm:$0xff]  ;;  %v57_v7 = vld [vmem:[%s1046_s1 + $0x28] sm:$0xff] }
   0x3   :  { %v63_v5 = vpack.c.bf16 %v55_v4, %v54_v2  ;;  %v48_v8 = vld [vmem:[%s1047_s0] sm:$0xff]  ;;  %v49_v9 = vld [vmem:[%s1047_s0 + $0x8] sm:$0xff]  ;;  %v64_v11 = vpack.c.bf16 %v57_v7, %v56_v6  ;;  %v58_v12 = vld [vmem:[%s1046_s1 + $0x30] sm:$0xff] }
   0x4   :  { %680 = vmatprep.subr.bf16.mxu0 %v62_v3  ;;  %v60_v10 = vpack.c.bf16 %v49_v9, %v48_v8  ;;  %v59_v13 = vld [vmem:[%s1046_s1 + $0x38] sm:$0xff]  ;;  %v50_v15 = vld [vmem:[%s1047_s0 + $0x10] sm:$0xff]  ;;  %v153_v18 = vld [vmem:[%s1048_s3] sm:$0xff] }
   0x5   :  { %681 = vmatpush3.bf16.msra.mxu0 %v62_v3  ;;  %v65_v14 = vpack.c.bf16 %v59_v13, %v58_v12  ;;  %v51_v16 = vld [vmem:[%s1047_s0 + $0x18] sm:$0xff]  ;;  %v154_v19 = vld [vmem:[%s1048_s3 + $0x8] sm:$0xff]  ;;  %v253_v20 = vld [vmem:[%s1049_s5] sm:$0xff] }
   0x6   :  { %682 = vmatprep.subr.bf16.mxu0 %v63_v5  ;;  %688 = vmatprep.mubr.msk.bf16.mxu0 %vm73_vm0, %v60_v10  ;;  %v61_v17 = vpack.c.bf16 %v51_v16, %v50_v15  ;;  %v163_v21 = vpack.c.bf16 %v154_v19, %v153_v18  ;;  %v254_v22 = vld [vmem:[%s1049_s5 + $0x8] sm:$0xff]  ;;  %v155_v24 = vld [vmem:[%s1048_s3 + $0x10] sm:$0xff]  ;;  %v156_v25 = vld [vmem:[%s1048_s3 + $0x18] sm:$0xff] }
   0x7   :  { %v261_v23 = vpack.c.bf16 %v254_v22, %v253_v20  ;;  %v255_v26 = vld [vmem:[%s1049_s5 + $0x10] sm:$0xff]  ;;  %v164_v27 = vpack.c.bf16 %v156_v25, %v155_v24  ;;  %v256_v28 = vld [vmem:[%s1049_s5 + $0x18] sm:$0xff]  ;;  %v157_v30 = vld [vmem:[%s1048_s3 + $0x20] sm:$0xff] }
   0x8   :  { %692 = vmatprep.subr.bf16.mxu1 %v163_v21  ;;  %v262_v29 = vpack.c.bf16 %v256_v28, %v255_v26  ;;  %v158_v31 = vld [vmem:[%s1048_s3 + $0x28] sm:$0xff]  ;;  %v257_v32 = vld [vmem:[%s1049_s5 + $0x20] sm:$0xff]  ;;  %v159_v36 = vld [vmem:[%s1048_s3 + $0x30] sm:$0xff] }
   0x9   :  { %683 = vmatpush3.bf16.msra.mxu0 %v63_v5  ;;  %693 = vmatpush3.bf16.msra.mxu1 %v163_v21  ;;  %v165_v33 = vpack.c.bf16 %v158_v31, %v157_v30  ;;  %v258_v34 = vld [vmem:[%s1049_s5 + $0x28] sm:$0xff]  ;;  %v160_v37 = vld [vmem:[%s1048_s3 + $0x38] sm:$0xff]  ;;  %v259_v38 = vld [vmem:[%s1049_s5 + $0x30] sm:$0xff] }
   0xa   :  { %684 = vmatprep.subr.bf16.mxu0 %v64_v11  ;;  %694 = vmatprep.subr.bf16.mxu1 %v164_v27  ;;  %v263_v35 = vpack.c.bf16 %v258_v34, %v257_v32  ;;  %v166_v39 = vpack.c.bf16 %v160_v37, %v159_v36  ;;  %v260_v40 = vld [vmem:[%s1049_s5 + $0x38] sm:$0xff]  ;;  %v613_v42 = vld [vmem:[%s1050_s2] ss:$0 sm:$0xff]  ;;  %v368_v10 = vld [vmem:[%s1051_s9 + $0x8] sm:$0xff] }
   0xb   :  { %v264_v41 = vpack.c.bf16 %v260_v40, %v259_v38  ;;  %v367_v9 = vld [vmem:[%s1051_s9] sm:$0xff]  ;;  %v369_v12 = vld [vmem:[%s1051_s9 + $0x10] sm:$0xff]  ;;  %v370_v13 = vld [vmem:[%s1051_s9 + $0x18] sm:$0xff] }
   0xc   :  { %v378_v15 = vpack.c.bf16 %v370_v13, %v369_v12  ;;  %v468_v16 = vld [vmem:[%s1052_s11 + $0x8] sm:$0xff]  ;;  %v371_v18 = vld [vmem:[%s1051_s9 + $0x20] sm:$0xff]  ;;  %v469_v20 = vld [vmem:[%s1052_s11 + $0x10] sm:$0xff] }
   0xd   :  { %685 = vmatpush3.bf16.msra.mxu0 %v64_v11  ;;  %695 = vmatpush3.bf16.msra.mxu1 %v164_v27  ;;  %v377_v11 = vpack.c.bf16 %v368_v10, %v367_v9  ;;  %v372_v19 = vld [vmem:[%s1051_s9 + $0x28] sm:$0xff]  ;;  %v470_v22 = vld [vmem:[%s1052_s11 + $0x18] sm:$0xff]  ;;  %v373_v24 = vld [vmem:[%s1051_s9 + $0x30] sm:$0xff] }
   0xe   :  { %686 = vmatprep.subr.bf16.mxu0 %v65_v14  ;;  %696 = vmatprep.subr.bf16.mxu1 %v165_v33  ;;  %v379_v21 = vpack.c.bf16 %v372_v19, %v371_v18  ;;  %v374_v25 = vld [vmem:[%s1051_s9 + $0x38] sm:$0xff]  ;;  %v620_v27 = vld [vmem:[%s1053_s4] ss:$0 sm:$0xff] }
   0xf   :  { %v380_v26 = vpack.c.bf16 %v374_v25, %v373_v24  ;;  %v627_v28 = vld [vmem:[%s1054_s6] ss:$0 sm:$0xff] }
  0x10   :  { %v635_v18 = vld [vmem:[%s1056_s8] ss:$0 sm:$0xff] }
  0x11   :  { %687 = vmatpush3.bf16.msra.mxu0 %v65_v14  ;;  %697 = vmatpush3.bf16.msra.mxu1 %v165_v33  ;;  %v467_v14 = vld [vmem:[%s1052_s11] sm:$0xff] }
  0x12   :  { %704 = vmatprep.subr.bf16.mxu0 %v261_v23  ;;  %698 = vmatprep.subr.bf16.mxu1 %v166_v39 }
  0x14   :  { %689 = vmatmul.mubr.msk.bf16.vlgmr.msra.gmra.mrb[0].mxu0 %vm73_vm0, %v61_v17  ;;  %v473_v17 = vpack.c.bf16 %v468_v16, %v467_v14 }
  0x15   :  { %705 = vmatpush3.bf16.msra.mxu0 %v261_v23  ;;  %699 = vmatpush3.bf16.msra.mxu1 %v166_v39  ;;  %v474_v23 = vpack.c.bf16 %v470_v22, %v469_v20 }
  0x16   :  { %706 = vmatprep.subr.bf16.mxu0 %v262_v29  ;;  %716 = vmatprep.subr.bf16.mxu1 %v377_v11 }
  0x19   :  { %707 = vmatpush3.bf16.msra.mxu0 %v262_v29 }
  0x1a   :  { %708 = vmatprep.subr.bf16.mxu0 %v263_v35 }
  0x1d   :  { %709 = vmatpush3.bf16.msra.mxu0 %v263_v35 }
  0x1e   :  { %710 = vmatprep.subr.bf16.mxu0 %v264_v41 }
  0x21   :  { %711 = vmatpush3.bf16.msra.mxu0 %v264_v41 }
  0x22   :  { %736 = vmatprep.subr.bf16.mxu0 %v473_v17 }
  0xe7   :  { %v690_v43 = vpop.f32.mrb[0].mxu0 }
  0xe8   :  { %v123_v44 = vadd.f32 %v690_v43, %v613_v42  ;;  %v114_v45 = vpop.f32.mrb[1].mxu0 }
  0xe9   :  { %v115_v46 = vadd.f32 %v613_v42, %v114_v45  ;;  %v691_v47 = vpop.f32.mrb[2].mxu0 }
  0xea   :  { %v135_v48 = vmin.f32 %v123_v44, 0.0  ;;  %v126_v49 = vadd.f32 %v691_v47, %v613_v42  ;;  %v117_v50 = vpop.f32.mrb[3].mxu0  ;;  %vm131_vm1 = vcmp.gt.f32.partialorder %v123_v44, 0.0 }
  0xeb   :  { %v133_v51 = vmin.f32 %v115_v46, 0.0  ;;  %v118_v52 = vadd.f32 %v613_v42, %v117_v50  ;;  %vm129_vm3 = vcmp.gt.f32.partialorder %v115_v46, 0.0 }
  0xec   :  { %v141_v53 = vmul.f32 1.442695, %v135_v48  ;;  %v136_v54 = vmin.f32 %v126_v49, 0.0  ;;  %vm132_vm2 = vcmp.gt.f32.partialorder %v126_v49, 0.0 }
  0xed   :  { %v137_v55 = vmul.f32 1.442695, %v133_v51  ;;  %v134_v56 = vmin.f32 %v118_v52, 0.0  ;;  %vm130_vm4 = vcmp.gt.f32.partialorder %v118_v52, 0.0 }
  0xee   :  { %748 = vpow2.f32 %v141_v53  ;;  %v143_v57 = vmul.f32 1.442695, %v136_v54 }
  0xef   :  { %750 = vpow2.f32 %v137_v55  ;;  %v139_v58 = vmul.f32 1.442695, %v134_v56 }
  0xf0   :  { %752 = vpow2.f32 %v143_v57 }
  0xf1   :  { %754 = vpow2.f32 %v139_v58 }
  0xf8   :  { %v749_v59 = vpop.eup %748 }
  0xf9   :  { %v751_v60 = vpop.eup %750  ;;  %v618_v61 = vadd.f32 -1.0, %v749_v59 }
  0xfa   :  { %v753_v62 = vpop.eup %752  ;;  %v616_v63 = vadd.f32 -1.0, %v751_v60 }
  0xfb   :  { %v755_v0 = vpop.eup %754  ;;  %v619_v1 = vadd.f32 -1.0, %v753_v62  ;;  %v151_v3 = vsel %vm131_vm1, %v123_v44, %v618_v61 }
  0xfc   :  { %v617_v2 = vadd.f32 -1.0, %v755_v0  ;;  %v149_v6 = vsel %vm129_vm3, %v115_v46, %v616_v63 }
  0xfd   :  { %v152_v4 = vsel %vm132_vm2, %v126_v49, %v619_v1 }
  0xfe   :  { %v162_v5 = vpack.c.bf16 %v152_v4, %v151_v3  ;;  %v150_v7 = vsel %vm130_vm4, %v118_v52, %v617_v2 }
  0xff   :  { %v161_v8 = vpack.c.bf16 %v150_v7, %v149_v6 }
 0x101   :  { %700 = vmatprep.mubr.msk.bf16.mxu1 %vm73_vm0, %v161_v8  ;;  %712 = vmatprep.mubr.msk.bf16.mxu0 %vm73_vm0, %v161_v8 }
 0x102   :  { %701 = vmatmul.mubr.msk.bf16.vlgmr.msra.gmra.mrb[0].mxu1 %vm73_vm0, %v162_v5  ;;  %713 = vmatmul.mubr.msk.bf16.vlgmr.msra.gmra.mrb[4].mxu0 %vm73_vm0, %v162_v5  ;;  %v634_v5 = vld [vmem:[%s1055_s7] ss:$0 sm:$0xff] }
 0x103   :  { %717 = vmatpush3.bf16.msra.mxu1 %v377_v11  ;;  %737 = vmatpush3.bf16.msra.mxu0 %v473_v17 }
 0x104   :  { %718 = vmatprep.subr.bf16.mxu1 %v378_v15  ;;  %738 = vmatprep.subr.bf16.mxu0 %v474_v23 }
 0x107   :  { %719 = vmatpush3.bf16.msra.mxu1 %v378_v15  ;;  %739 = vmatpush3.bf16.msra.mxu0 %v474_v23 }
 0x108   :  { %720 = vmatprep.subr.bf16.mxu1 %v379_v21 }
 0x10b   :  { %721 = vmatpush3.bf16.msra.mxu1 %v379_v21 }
 0x10c   :  { %722 = vmatprep.subr.bf16.mxu1 %v380_v26 }
 0x10f   :  { %723 = vmatpush3.bf16.msra.mxu1 %v380_v26 }
 0x1d5   :  { %v702_v29 = vpop.f32.mrb[0].mxu1  ;;  %v714_v30 = vpop.f32.mrb[4].mxu0 }
 0x1d6   :  { %v990_v31 = vadd.f32 %v702_v29, %v620_v27  ;;  %v315_v32 = vadd.f32 %v714_v30, %v627_v28  ;;  %v214_v33 = vpop.f32.mrb[1].mxu1  ;;  %v306_v34 = vpop.f32.mrb[5].mxu0 }
 0x1d7   :  { %v992_v35 = vadd.f32 %v620_v27, %v214_v33  ;;  %v307_v36 = vadd.f32 %v627_v28, %v306_v34  ;;  %v703_v37 = vpop.f32.mrb[2].mxu1  ;;  %v715_v38 = vpop.f32.mrb[6].mxu0 }
 0x1d8   :  { %v235_v39 = vmin.f32 %v990_v31, 0.0  ;;  %v327_v40 = vmin.f32 %v315_v32, 0.0  ;;  %v217_v41 = vpop.f32.mrb[3].mxu1  ;;  %v309_v42 = vpop.f32.mrb[7].mxu0  ;;  %v226_v47 = vadd.f32 %v703_v37, %v620_v27  ;;  %v318_v48 = vadd.f32 %v715_v38, %v627_v28  ;;  %v477_v38 = vld [vmem:[%s1057_s12 + $0x10] sm:$0xff] }
 0x1d9   :  { %v233_v43 = vmin.f32 %v992_v35, 0.0  ;;  %v325_v44 = vmin.f32 %v307_v36, 0.0  ;;  %v218_v51 = vadd.f32 %v620_v27, %v217_v41  ;;  %v310_v52 = vadd.f32 %v627_v28, %v309_v42 }
 0x1da   :  { %v241_v45 = vmul.f32 1.442695, %v235_v39  ;;  %v333_v46 = vmul.f32 1.442695, %v327_v40  ;;  %v236_v53 = vmin.f32 %v226_v47, 0.0  ;;  %v328_v54 = vmin.f32 %v318_v48, 0.0 }
 0x1db   :  { %v237_v49 = vmul.f32 1.442695, %v233_v43  ;;  %v329_v50 = vmul.f32 1.442695, %v325_v44  ;;  %v234_v55 = vmin.f32 %v218_v51, 0.0  ;;  %v326_v57 = vmin.f32 %v310_v52, 0.0 }
 0x1dc   :  { %756 = vpow2.f32 %v241_v45  ;;  %v243_v56 = vmul.f32 1.442695, %v236_v53  ;;  %v335_v58 = vmul.f32 1.442695, %v328_v54  ;;  %vm323_vm5 = vcmp.gt.f32.partialorder %v315_v32, 0.0  ;;  %v478_v39 = vld [vmem:[%s1057_s12 + $0x18] sm:$0xff] }
 0x1dd   :  { %758 = vpow2.f32 %v333_v46  ;;  %v239_v59 = vmul.f32 1.442695, %v234_v55  ;;  %v331_v60 = vmul.f32 1.442695, %v326_v57  ;;  %vm231_vm7 = vcmp.gt.f32.partialorder %v990_v31, 0.0 }
 0x1de   :  { %760 = vpow2.f32 %v237_v49  ;;  %vm229_vm8 = vcmp.gt.f32.partialorder %v992_v35, 0.0  ;;  %vm321_vm9 = vcmp.gt.f32.partialorder %v307_v36, 0.0  ;;  %vm232_vm10 = vcmp.gt.f32.partialorder %v226_v47, 0.0  ;;  %v636_v45 = vld [vmem:[%s1058_s10] ss:$0 sm:$0xff] }
 0x1df   :  { %762 = vpow2.f32 %v329_v50  ;;  %vm324_vm11 = vcmp.gt.f32.partialorder %v318_v48, 0.0  ;;  %vm230_vm12 = vcmp.gt.f32.partialorder %v218_v51, 0.0  ;;  %vm322_vm13 = vcmp.gt.f32.partialorder %v310_v52, 0.0 }
 0x1e0   :  { %764 = vpow2.f32 %v243_v56  ;;  %v482_v40 = vpack.c.bf16 %v478_v39, %v477_v38 }
 0x1e1   :  { %766 = vpow2.f32 %v335_v58 }
 0x1e2   :  { %768 = vpow2.f32 %v239_v59 }
 0x1e3   :  { %770 = vpow2.f32 %v331_v60 }
 0x1e6   :  { %v757_v61 = vpop.eup %756 }
 0x1e7   :  { %v759_v62 = vpop.eup %758  ;;  %v625_v2 = vadd.f32 -1.0, %v757_v61 }
 0x1e8   :  { %v761_v63 = vpop.eup %760  ;;  %v632_v0 = vadd.f32 -1.0, %v759_v62 }
 0x1e9   :  { %v763_v1 = vpop.eup %762  ;;  %v623_v8 = vadd.f32 -1.0, %v761_v63  ;;  %v251_v14 = vsel %vm231_vm7, %v990_v31, %v625_v2 }
 0x1ea   :  { %v765_v3 = vpop.eup %764  ;;  %v343_v4 = vsel %vm323_vm5, %v315_v32, %v632_v0  ;;  %v630_v6 = vadd.f32 -1.0, %v763_v1 }
 0x1eb   :  { %v767_v7 = vpop.eup %766  ;;  %v626_v9 = vadd.f32 -1.0, %v765_v3  ;;  %v354_v15 = vmul.f32 %v634_v5, %v343_v4  ;;  %v249_v22 = vsel %vm229_vm8, %v992_v35, %v623_v8  ;;  %v475_v35 = vld [vmem:[%s1057_s12] sm:$0xff] }
 0x1ec   :  { %v769_v10 = vpop.eup %768  ;;  %v341_v11 = vsel %vm321_vm9, %v307_v36, %v630_v6  ;;  %v633_v12 = vadd.f32 -1.0, %v767_v7  ;;  %v476_v36 = vld [vmem:[%s1057_s12 + $0x8] sm:$0xff] }
 0x1ed   :  { %v771_v13 = vpop.eup %770  ;;  %v252_v16 = vsel %vm232_vm10, %v226_v47, %v626_v9  ;;  %v624_v17 = vadd.f32 -1.0, %v769_v10  ;;  %v352_v23 = vmul.f32 %v634_v5, %v341_v11  ;;  %v365_v28 = vadd.f32 %v635_v18, %v354_v15 }
 0x1ee   :  { %v472_v19 = vpack.c.bf16 %v252_v16, %v251_v14  ;;  %v344_v20 = vsel %vm324_vm11, %v318_v48, %v633_v12  ;;  %v631_v21 = vadd.f32 -1.0, %v771_v13  ;;  %v481_v37 = vpack.c.bf16 %v476_v36, %v475_v35  ;;  %v647_v13 = vld [vmem:[%s1059_s13] ss:$0 sm:$0xff] }
 0x1ef   :  { %v355_v24 = vmul.f32 %v634_v5, %v344_v20  ;;  %v250_v25 = vsel %vm230_vm12, %v218_v51, %v624_v17  ;;  %v363_v31 = vadd.f32 %v635_v18, %v352_v23 }
 0x1f0   :  { %v471_v26 = vpack.c.bf16 %v250_v25, %v249_v22  ;;  %v342_v27 = vsel %vm322_vm13, %v310_v52, %v631_v21  ;;  %728 = vmatprep.subr.bf16.mxu1 %v481_v37 }
 0x1f1   :  { %v366_v29 = vadd.f32 %v635_v18, %v355_v24  ;;  %v353_v30 = vmul.f32 %v634_v5, %v342_v27 }
 0x1f2   :  { %740 = vmatprep.mubr.msk.bf16.mxu0 %vm483_vm6, %v471_v26 }
 0x1f3   :  { %v376_v32 = vpack.c.bf16 %v366_v29, %v365_v28  ;;  %v364_v33 = vadd.f32 %v635_v18, %v353_v30  ;;  %741 = vmatmul.mubr.msk.bf16.vlgmr.msra.gmra.mrb[8].mxu0 %vm483_vm6, %v472_v19 }
 0x1f5   :  { %v375_v34 = vpack.c.bf16 %v364_v33, %v363_v31 }
 0x1f7   :  { %724 = vmatprep.mubr.msk.bf16.mxu1 %vm73_vm0, %v375_v34 }
 0x1f8   :  { %725 = vmatmul.mubr.msk.bf16.vlgmr.msra.gmra.mrb[4].mxu1 %vm73_vm0, %v376_v32 }
 0x1f9   :  { %729 = vmatpush3.bf16.msra.mxu1 %v481_v37 }
 0x1fa   :  { %730 = vmatprep.subr.bf16.mxu1 %v482_v40 }
 0x1fd   :  { %731 = vmatpush3.bf16.msra.mxu1 %v482_v40 }
 0x2c6   :  { %v742_v41 = vpop.f32.mrb[8].mxu0 }
 0x2c7   :  { %v579_v42 = vpop.f32.mrb[9].mxu0 }
 0x2c8   :  { %v743_v43 = vpop.f32.mrb[10].mxu0 }
 0x2c9   :  { %v582_v44 = vpop.f32.mrb[11].mxu0 }
 0x2cb   :  { %v726_v46 = vpop.f32.mrb[4].mxu1 }
 0x2cc   :  { %v437_v47 = vadd.f32 %v726_v46, %v636_v45  ;;  %v428_v48 = vpop.f32.mrb[5].mxu1 }
 0x2cd   :  { %v429_v49 = vadd.f32 %v636_v45, %v428_v48  ;;  %v727_v50 = vpop.f32.mrb[6].mxu1 }
 0x2ce   :  { %v449_v51 = vmin.f32 %v437_v47, 0.0  ;;  %v440_v52 = vadd.f32 %v727_v50, %v636_v45  ;;  %v431_v53 = vpop.f32.mrb[7].mxu1  ;;  %vm445_vm14 = vcmp.gt.f32.partialorder %v437_v47, 0.0 }
 0x2cf   :  { %v447_v54 = vmin.f32 %v429_v49, 0.0  ;;  %v432_v55 = vadd.f32 %v636_v45, %v431_v53  ;;  %vm443_vm0 = vcmp.gt.f32.partialorder %v429_v49, 0.0 }
 0x2d0   :  { %v455_v56 = vmul.f32 1.442695, %v449_v51  ;;  %v450_v57 = vmin.f32 %v440_v52, 0.0  ;;  %vm446_vm15 = vcmp.gt.f32.partialorder %v440_v52, 0.0 }
 0x2d1   :  { %v451_v58 = vmul.f32 1.442695, %v447_v54  ;;  %v448_v59 = vmin.f32 %v432_v55, 0.0  ;;  %vm444_vm1 = vcmp.gt.f32.partialorder %v432_v55, 0.0 }
 0x2d2   :  { %772 = vpow2.f32 %v455_v56  ;;  %v457_v60 = vmul.f32 1.442695, %v450_v57 }
 0x2d3   :  { %774 = vpow2.f32 %v451_v58  ;;  %v453_v61 = vmul.f32 1.442695, %v448_v59 }
 0x2d4   :  { %776 = vpow2.f32 %v457_v60 }
 0x2d5   :  { %778 = vpow2.f32 %v453_v61 }
 0x2dc   :  { %v773_v62 = vpop.eup %772 }
 0x2dd   :  { %v775_v63 = vpop.eup %774  ;;  %v641_v0 = vadd.f32 -1.0, %v773_v62 }
 0x2de   :  { %v777_v1 = vpop.eup %776  ;;  %v639_v2 = vadd.f32 -1.0, %v775_v63 }
 0x2df   :  { %v779_v3 = vpop.eup %778  ;;  %v642_v4 = vadd.f32 -1.0, %v777_v1  ;;  %v465_v6 = vsel %vm445_vm14, %v437_v47, %v641_v0 }
 0x2e0   :  { %v640_v5 = vadd.f32 -1.0, %v779_v3  ;;  %v463_v8 = vsel %vm443_vm0, %v429_v49, %v639_v2 }
 0x2e1   :  { %v466_v7 = vsel %vm446_vm15, %v440_v52, %v642_v4 }
 0x2e2   :  { %v480_v9 = vpack.c.bf16 %v466_v7, %v465_v6  ;;  %v464_v10 = vsel %vm444_vm1, %v432_v55, %v640_v5 }
 0x2e3   :  { %v479_v11 = vpack.c.bf16 %v464_v10, %v463_v8 }
 0x2e5   :  { %732 = vmatprep.mubr.msk.bf16.mxu1 %vm483_vm6, %v479_v11 }
 0x2e6   :  { %733 = vmatmul.mubr.msk.bf16.vlgmr.msra.gmra.mrb[8].mxu1 %vm483_vm6, %v480_v9 }
 0x3b9   :  { %v734_v12 = vpop.f32.mrb[8].mxu1 }
 0x3ba   :  { %v588_v14 = vadd.f32 %v742_v41, %v734_v12  ;;  %v524_v15 = vpop.f32.mrb[9].mxu1 }
 0x3bb   :  { %v580_v16 = vadd.f32 %v579_v42, %v524_v15  ;;  %v735_v17 = vpop.f32.mrb[10].mxu1 }
 0x3bc   :  { %v603_v18 = vadd.f32 %v647_v13, %v588_v14  ;;  %v591_v19 = vadd.f32 %v743_v43, %v735_v17  ;;  %v527_v20 = vpop.f32.mrb[11].mxu1 }
 0x3bd   :  { %v601_v21 = vadd.f32 %v647_v13, %v580_v16  ;;  %v583_v22 = vadd.f32 %v582_v44, %v527_v20 }
 0x3be   :  { %607 = vst [vmem:[%s1060_s14 + $0x10] sm:$0xff] %v603_v18  ;;  %v604_v23 = vadd.f32 %v647_v13, %v591_v19 }
 0x3bf   :  { %605 = vst [vmem:[%s1060_s14] sm:$0xff] %v601_v21  ;;  %v602_v24 = vadd.f32 %v647_v13, %v583_v22 }
 0x3c0   :  { %608 = vst [vmem:[%s1060_s14 + $0x18] sm:$0xff] %v604_v23 }
 0x3c1   :  { %606 = vst [vmem:[%s1060_s14 + $0x8] sm:$0xff] %v602_v24 }

</bundles_post_ra>
